<compile_context>
chip_gen: v7x
topology: tpu7x:2x2x1
jax: 0.10.0
libtpu: 0.0.40
codegen_flags: <defaults>
</compile_context>

<pallas_src>
import functools

import numpy as np
import jax
import jax.numpy as jnp
from jax import lax
from jax.experimental import pallas as pl
from jax.experimental.pallas import tpu as pltpu

REFINE_SCALE = 0.1   # wandb.config.refine_scale stand-in
BN_EPS = 1e-5        # torch.nn.BatchNorm2d default eps


# ======================= Pallas kernel =======================

def _refine_down_kernel(*refs, cin, n_stage, depth, downsample):
    """Whole RefineDown.forward for one batch image (grid over batch).

    Ref order: x, add, [w_l (3,K_l,N_l), sb_l (2,N_l)] * n_layers, sel,
               refined_out (Ho, Wo*cout), add_out (Ho, Wo*out_fc).
    Activations are lane-dense (rows, width*channels) slabs; every 3x3 conv is
    3 banded MXU matmuls (column padding folded into the weights, row padding
    via a single zero-row concat), with the BN-folded affine (+ReLU) fused.
    """
    n_layers = n_stage + (1 if downsample else 0) + depth
    x_ref, a_ref = refs[0], refs[1]
    w_refs = [refs[2 + 2 * i] for i in range(n_layers)]
    sb_refs = [refs[3 + 2 * i] for i in range(n_layers)]
    sel_ref = refs[2 + 2 * n_layers]
    refined_ref = refs[3 + 2 * n_layers]
    addout_ref = refs[4 + 2 * n_layers]

    H, Lx = x_ref.shape                      # (H, W*cin)
    Ho = H // 2 if downsample else H

    def pad_rows(v):
        # Row slabs for a stride-1 'same' conv: (dy=0, dy=1, dy=2).
        z = jnp.zeros((1, v.shape[1]), v.dtype)
        up = jnp.concatenate([z, v[:-1, :]], axis=0)
        dn = jnp.concatenate([v[1:, :], z], axis=0)
        return up, v, dn

    def conv(slabs, w_ref, sb_ref, relu):
        # 3x3 conv = 3 banded matmuls (bf16 operands, f32 accum) + fused affine.
        acc = jnp.dot(slabs[0], w_ref[0], preferred_element_type=jnp.float32)
        acc = acc + jnp.dot(slabs[1], w_ref[1], preferred_element_type=jnp.float32)
        acc = acc + jnp.dot(slabs[2], w_ref[2], preferred_element_type=jnp.float32)
        y = acc * sb_ref[0:1, :] + sb_ref[1:2, :]
        if relu:
            y = jnp.maximum(y, 0.0)
        return y                              # (rows, Wout*cout) f32

    xv = x_ref[...]                           # (H, W*cin) bf16
    li = 0

    # -------- stage path: feature_map = stage(input_feats[:, :fc]) ----------
    if downsample:
        # MaxPool2d(2): row-pair max, then lane-shifted column-pair max.  Only
        # even lane-blocks hold pooled values; odd blocks are junk matched by
        # all-zero rows of the first stage conv's banded weights.
        x3 = xv.reshape(Ho, 2, Lx)
        rowmax = jnp.maximum(x3[:, 0, :], x3[:, 1, :])
        shifted = jnp.concatenate([rowmax[:, cin:], rowmax[:, :cin]], axis=1)
        cur = jnp.maximum(rowmax, shifted)    # (Ho, W*cin)
    else:
        cur = xv                              # (H, W*cin)
    fmap = None
    for _ in range(n_stage):
        fmap = conv(pad_rows(cur), w_refs[li], sb_refs[li], relu=True)
        li += 1
        cur = fmap.astype(jnp.bfloat16)
    # Park fmap in the VMEM-resident output block; read back at the end.
    addout_ref[...] = fmap

    # -------- refine path ----------------------------------------------------
    rv = xv + a_ref[...]                      # (H, W*cin) bf16
    if downsample:
        # Stride-2 conv, padding 1: even/odd full-res rows feed dy=1 / dy={0,2};
        # the stride-2 column pattern is folded into the banded weights.
        r3 = rv.reshape(Ho, 2, Lx)
        ev, ov = r3[:, 0, :], r3[:, 1, :]
        z = jnp.zeros((1, Lx), rv.dtype)
        slabs = (jnp.concatenate([z, ov[:Ho - 1, :]], axis=0), ev, ov)
        y = conv(slabs, w_refs[li], sb_refs[li], relu=False)
        li += 1
        cur = y.astype(jnp.bfloat16)          # (Ho, Wo*cin)
    else:
        cur = rv
    refined = None
    for d in range(depth):
        refined = conv(pad_rows(cur), w_refs[li], sb_refs[li],
                       relu=(d < depth - 1))
        li += 1
        cur = refined.astype(jnp.bfloat16)

    refined_ref[...] = refined                # lane-dense (Ho, Wo*cout) f32
    # additional = refine_scale * refined[:, :out_fc] + fmap; the channel
    # subset stays lane-dense via a block-diagonal selection matmul.
    addout_ref[...] = addout_ref[...] + jnp.dot(
        refined, sel_ref[...], preferred_element_type=jnp.float32)


# ======================= parameter folding / banded weights ==================

def _fold_affine(p, batch_norm):
    """Fold eval-mode BatchNorm2d (or plain conv bias) into (scale, bias)."""
    cout = p["w"].shape[-1]
    if batch_norm:
        scale = p["gamma"] / jnp.sqrt(p["rv"] + BN_EPS)
        bias = (p["b"] - p["rm"]) * scale + p["beta"]
    else:
        scale = jnp.ones((cout,), jnp.float32)
        bias = p["b"]
    return scale, bias


def _band_weights(w_hwio, win_blocks, wout_blocks, colmap):
    """Fold a 3x3 conv's column taps (incl. 'same'/stride-2 zero padding and
    any channel-subset selection via zero rows) into 3 block-banded matrices,
    one per kernel row dy:
        W[dy][w*ci + k, j*co + m] = w_hwio[dy, dx, k, m]  iff colmap(j, dx) == w
    so that  out[i, j*co+m] = sum_dy  slab_dy[i, :] @ W[dy][:, j*co+m]."""
    ci, co = int(w_hwio.shape[2]), int(w_hwio.shape[3])
    mats = []
    for dy in range(3):
        m = jnp.zeros((win_blocks * ci, wout_blocks * co), jnp.float32)
        for dx in range(3):
            s = np.zeros((win_blocks, wout_blocks), np.float32)
            for j in range(wout_blocks):
                wblk = colmap(j, dx)
                if 0 <= wblk < win_blocks:
                    s[wblk, j] = 1.0
            m = m + jnp.kron(jnp.asarray(s), w_hwio[dy, dx].astype(jnp.float32))
        mats.append(m)
    return jnp.stack(mats)                    # (3, win*ci, wout*co)


# ======================= wrapper =======================

def refine_down_forward(params, input_feats, additional_feats):
    """RefineDown.forward.  Inputs NCHW float32 (PyTorch layout); returns
    (refined_feats, additional_feats_out) in NCHW float32."""
    cfg = params["cfg"]
    fc, downsample = cfg["feature_chns"], cfg["downsample"]
    depth = len(params["block"])
    n_stage = len(params["stage"])
    assert n_stage >= 1 and depth >= 1, "need at least one stage/block conv"

    x = jnp.transpose(input_feats, (0, 2, 3, 1)).astype(jnp.bfloat16)
    a = jnp.transpose(additional_feats, (0, 2, 3, 1)).astype(jnp.bfloat16)
    B, H, W, cin = x.shape
    if downsample:
        assert H % 2 == 0 and W % 2 == 0
    Ho, Wo = (H // 2, W // 2) if downsample else (H, W)

    assert int(params["stage"][0]["w"].shape[2]) == fc
    out_fc = int(params["stage"][-1]["w"].shape[-1])
    cout = int(params["block"][-1]["w"].shape[-1])
    assert cout >= out_fc, "output_chns must cover the stage feature channels"

    # --- per-layer banded weights + folded (scale, bias) -----------------------
    layers = []                               # (wmat (3,K,N), (scale, bias), co)
    for si, p in enumerate(params["stage"]):
        co = int(p["w"].shape[-1])
        if si == 0:
            # `[:, :fc]` channel subset folded in as zero weight rows.
            w_emb = jnp.zeros((3, 3, cin, co), jnp.float32).at[:, :, :fc, :].set(
                p["w"].astype(jnp.float32))
            if downsample:   # input = pooled map living on even lane-blocks
                wm = _band_weights(w_emb, W, Wo, lambda j, dx: 2 * (j + dx - 1))
            else:
                wm = _band_weights(w_emb, W, Wo, lambda j, dx: j + dx - 1)
        else:
            wm = _band_weights(p["w"], Wo, Wo, lambda j, dx: j + dx - 1)
        layers.append((wm, _fold_affine(p, batch_norm=False), co))
    if downsample:
        p = params["down"]
        wm = _band_weights(p["w"], W, Wo, lambda j, dx: 2 * j + dx - 1)
        layers.append((wm, _fold_affine(p, batch_norm=False),
                       int(p["w"].shape[-1])))
    for p in params["block"]:
        wm = _band_weights(p["w"], Wo, Wo, lambda j, dx: j + dx - 1)
        layers.append((wm, _fold_affine(p, batch_norm=True),
                       int(p["w"].shape[-1])))

    # --- operands: flat lane-dense layouts; the (W,C)->W*C reshape is free -----
    x2 = x.reshape(B, H, W * cin)
    a2 = a.reshape(B, H, W * cin)
    operands = [x2, a2]
    in_specs = [pl.BlockSpec((None, H, W * cin), lambda b: (b, 0, 0)),
                pl.BlockSpec((None, H, W * cin), lambda b: (b, 0, 0))]
    for wm, (scale, bias), co in layers:
        n_l = Wo * co
        operands.append(wm.astype(jnp.bfloat16))
        operands.append(jnp.stack([jnp.tile(scale, Wo),
                                   jnp.tile(bias, Wo)]).astype(jnp.float32))
        in_specs.append(pl.BlockSpec(wm.shape, lambda b: (0, 0, 0)))
        in_specs.append(pl.BlockSpec((2, n_l), lambda b: (0, 0)))
    # additional = refine_scale * refined[:, :out_fc] + fmap, kept lane-dense
    # via a block-diagonal selection matmul.
    sel = jnp.kron(jnp.eye(Wo, dtype=jnp.float32),
                   REFINE_SCALE * jnp.eye(cout, out_fc, dtype=jnp.float32))
    operands.append(sel)
    in_specs.append(pl.BlockSpec((Wo * cout, Wo * out_fc), lambda b: (0, 0)))

    out_shape = (jax.ShapeDtypeStruct((B, Ho, Wo * cout), jnp.float32),
                 jax.ShapeDtypeStruct((B, Ho, Wo * out_fc), jnp.float32))
    out_specs = [pl.BlockSpec((None, Ho, Wo * cout), lambda b: (b, 0, 0)),
                 pl.BlockSpec((None, Ho, Wo * out_fc), lambda b: (b, 0, 0))]

    op_bytes = sum(int(o.size) * o.dtype.itemsize for o in operands)
    out_bytes = Ho * (Wo * cout + Wo * out_fc) * 4
    vmem_limit = int(min(64 << 20, max(32 << 20, 4 * (op_bytes + out_bytes))))

    kernel = functools.partial(_refine_down_kernel, cin=cin, n_stage=n_stage,
                               depth=depth, downsample=downsample)
    refined2, addout2 = pl.pallas_call(
        kernel,
        out_shape=out_shape,
        grid_spec=pltpu.PrefetchScalarGridSpec(
            num_scalar_prefetch=0, grid=(B,),
            in_specs=in_specs, out_specs=out_specs),
        compiler_params=pltpu.CompilerParams(
            dimension_semantics=("parallel",),
            vmem_limit_bytes=vmem_limit),
    )(*operands)

    refined = refined2.reshape(B, Ho, Wo, cout)
    addout = addout2.reshape(B, Ho, Wo, out_fc)
    return (jnp.transpose(refined, (0, 3, 1, 2)),
            jnp.transpose(addout, (0, 3, 1, 2)))


# ======================= pure-XLA reference (same precision policy) ==========

def refine_down_reference(params, input_feats, additional_feats):
    cfg = params["cfg"]
    fc, downsample = cfg["feature_chns"], cfg["downsample"]
    depth = len(params["block"])
    x = jnp.transpose(input_feats, (0, 2, 3, 1)).astype(jnp.bfloat16)
    a = jnp.transpose(additional_feats, (0, 2, 3, 1)).astype(jnp.bfloat16)

    def conv(h, p, bn, relu, stride):
        scale, bias = _fold_affine(p, bn)
        y = lax.conv_general_dilated(
            h.astype(jnp.bfloat16), p["w"].astype(jnp.bfloat16),
            window_strides=(stride, stride), padding=((1, 1), (1, 1)),
            dimension_numbers=("NHWC", "HWIO", "NHWC"),
            preferred_element_type=jnp.float32)
        y = y * scale.reshape(1, 1, 1, -1) + bias.reshape(1, 1, 1, -1)
        if relu:
            y = jnp.maximum(y, 0.0)
        return y  # float32

    s = x[..., :fc]
    if downsample:
        B, H, W, C = s.shape
        s = jnp.max(s.reshape(B, H // 2, 2, W // 2, 2, C), axis=(2, 4))
    for p in params["stage"]:
        s = conv(s, p, bn=False, relu=True, stride=1)
    fmap = s
    out_fc = fmap.shape[-1]

    r = x + a
    if downsample:
        r = conv(r, params["down"], bn=False, relu=False, stride=2)
    for d, p in enumerate(params["block"]):
        r = conv(r, p, bn=True, relu=(d < depth - 1), stride=1)
    add_out = REFINE_SCALE * r[..., :out_fc] + fmap
    return (jnp.transpose(r, (0, 3, 1, 2)),
            jnp.transpose(add_out, (0, 3, 1, 2)))


# ======================= synthetic parameters =======================

def init_conv(key, cin, cout):
    """Synthetic Conv2d(cin, cout, 3, bias=True) parameters, weights HWIO."""
    kw, kb = jax.random.split(key)
    std = 1.0 / jnp.sqrt(9.0 * cin)
    return {"w": jax.random.normal(kw, (3, 3, cin, cout), jnp.float32) * std,
            "b": jax.random.normal(kb, (cout,), jnp.float32) * 0.01}


def init_conv_layer(key, cin, cout):
    """ConvLayer = Conv2d(3x3, 'same') + BatchNorm2d (eval running stats)."""
    p = init_conv(key, cin, cout)
    kg, kb, km, kv = jax.random.split(jax.random.fold_in(key, 1), 4)
    p.update({
        "gamma": jax.random.uniform(kg, (cout,), jnp.float32, 0.5, 1.5),
        "beta": jax.random.normal(kb, (cout,), jnp.float32) * 0.05,
        "rm": jax.random.normal(km, (cout,), jnp.float32) * 0.05,
        "rv": jax.random.uniform(kv, (cout,), jnp.float32, 0.5, 1.5),
    })
    return p


def init_refine_down(key, *, input_chns, output_chns, feature_chns,
                     stage_chns=(16, 16), depth=3, downsample=True):
    """RefineDown(input_chns, output_chns, feature_chns, stage, depth, downsample).
    `stage` is modelled as the DISTS VGG stage it receives in NRModel:
    (MaxPool2d(2) iff downsample) followed by Conv3x3+ReLU per entry of
    stage_chns (synthetic deterministic weights, not a checkpoint load)."""
    ks = jax.random.split(key, 2 + len(stage_chns) + depth)
    stage = []
    ci = feature_chns
    for i, co in enumerate(stage_chns):
        stage.append(init_conv(ks[i], ci, co))
        ci = co
    block = [init_conv_layer(ks[len(stage_chns) + j], input_chns, input_chns)
             for j in range(depth - 1)]
    block.append(init_conv_layer(ks[len(stage_chns) + depth - 1],
                                 input_chns, output_chns))
    params = {"stage": stage, "block": block,
              "cfg": {"feature_chns": feature_chns, "depth": depth,
                      "downsample": downsample}}
    if downsample:
        params["down"] = init_conv(ks[-1], input_chns, input_chns)
    return params


# ======================= main =======================

if __name__ == "__main__":
    key = jax.random.PRNGKey(0)
    kp1, kp2, kx1, ka1, kx2, ka2 = jax.random.split(key, 6)

    # RefineDown(input_chns=16, output_chns=24, feature_chns=8,
    #            stage=DISTS stage (pool + 2 convs), depth=3, downsample=True)
    params = init_refine_down(kp1, input_chns=16, output_chns=24,
                              feature_chns=8, stage_chns=(16, 16),
                              depth=3, downsample=True)
    x = jax.random.normal(kx1, (2, 16, 16, 16), jnp.float32)     # NCHW
    add = jax.random.normal(ka1, (2, 16, 16, 16), jnp.float32)   # NCHW
    refined, add_out = refine_down_forward(params, x, add)
    refined, add_out = jax.block_until_ready((refined, add_out))
    assert refined.shape == (2, 24, 8, 8) and refined.dtype == jnp.float32
    assert add_out.shape == (2, 16, 8, 8) and add_out.dtype == jnp.float32
    r_ref, a_ref = refine_down_reference(params, x, add)
    assert jnp.allclose(refined, r_ref, atol=2e-2, rtol=2e-2), \
        float(jnp.max(jnp.abs(refined - r_ref)))
    assert jnp.allclose(add_out, a_ref, atol=2e-2, rtol=2e-2), \
        float(jnp.max(jnp.abs(add_out - a_ref)))

    # downsample=False variant (first RefineDown in NRModel: stage 0, no pool).
    params2 = init_refine_down(kp2, input_chns=16, output_chns=16,
                               feature_chns=8, stage_chns=(16, 16),
                               depth=3, downsample=False)
    x2 = jax.random.normal(kx2, (2, 16, 16, 16), jnp.float32)
    add2 = jax.random.normal(ka2, (2, 16, 16, 16), jnp.float32)
    r2, ao2 = refine_down_forward(params2, x2, add2)
    r2, ao2 = jax.block_until_ready((r2, ao2))
    assert r2.shape == (2, 16, 16, 16) and ao2.shape == (2, 16, 16, 16)
    r2_ref, ao2_ref = refine_down_reference(params2, x2, add2)
    assert jnp.allclose(r2, r2_ref, atol=2e-2, rtol=2e-2)
    assert jnp.allclose(ao2, ao2_ref, atol=2e-2, rtol=2e-2)

    print("KERNEL_OK")
</pallas_src>

<mosaic_0001>
module attributes {stable_mosaic.version = 11 : i64} {
  func.func @_refine_down_kernel(%arg0: i32, %arg1: memref<1x16x256xbf16, #tpu.memory_space<vmem>>, %arg2: memref<1x16x256xbf16, #tpu.memory_space<vmem>>, %arg3: memref<3x256x128xbf16, #tpu.memory_space<vmem>>, %arg4: memref<2x128xf32, #tpu.memory_space<vmem>>, %arg5: memref<3x128x128xbf16, #tpu.memory_space<vmem>>, %arg6: memref<2x128xf32, #tpu.memory_space<vmem>>, %arg7: memref<3x256x128xbf16, #tpu.memory_space<vmem>>, %arg8: memref<2x128xf32, #tpu.memory_space<vmem>>, %arg9: memref<3x128x128xbf16, #tpu.memory_space<vmem>>, %arg10: memref<2x128xf32, #tpu.memory_space<vmem>>, %arg11: memref<3x128x128xbf16, #tpu.memory_space<vmem>>, %arg12: memref<2x128xf32, #tpu.memory_space<vmem>>, %arg13: memref<3x128x192xbf16, #tpu.memory_space<vmem>>, %arg14: memref<2x192xf32, #tpu.memory_space<vmem>>, %arg15: memref<192x128xf32, #tpu.memory_space<vmem>>, %arg16: memref<1x8x192xf32, #tpu.memory_space<vmem>>, %arg17: memref<1x8x128xf32, #tpu.memory_space<vmem>>) attributes {dimension_semantics = [#tpu.dimension_semantics<parallel>], iteration_bounds = array<i64: 2>, scalar_prefetch = 0 : i64, scratch_operands = 0 : i64, tpu.core_type = #tpu.core_type<tc>, window_params = [{transform_indices = @transform_0, window_bounds = array<i64: 1, 16, 256>}, {transform_indices = @transform_1, window_bounds = array<i64: 1, 16, 256>}, {pipeline_mode = #tpu.pipeline_mode<synchronous>, transform_indices = @transform_2, window_bounds = array<i64: 3, 256, 128>}, {pipeline_mode = #tpu.pipeline_mode<synchronous>, transform_indices = @transform_3, window_bounds = array<i64: 2, 128>}, {pipeline_mode = #tpu.pipeline_mode<synchronous>, transform_indices = @transform_4, window_bounds = array<i64: 3, 128, 128>}, {pipeline_mode = #tpu.pipeline_mode<synchronous>, transform_indices = @transform_5, window_bounds = array<i64: 2, 128>}, {pipeline_mode = #tpu.pipeline_mode<synchronous>, transform_indices = @transform_6, window_bounds = array<i64: 3, 256, 128>}, {pipeline_mode = #tpu.pipeline_mode<synchronous>, transform_indices = @transform_7, window_bounds = array<i64: 2, 128>}, {pipeline_mode = #tpu.pipeline_mode<synchronous>, transform_indices = @transform_8, window_bounds = array<i64: 3, 128, 128>}, {pipeline_mode = #tpu.pipeline_mode<synchronous>, transform_indices = @transform_9, window_bounds = array<i64: 2, 128>}, {pipeline_mode = #tpu.pipeline_mode<synchronous>, transform_indices = @transform_10, window_bounds = array<i64: 3, 128, 128>}, {pipeline_mode = #tpu.pipeline_mode<synchronous>, transform_indices = @transform_11, window_bounds = array<i64: 2, 128>}, {pipeline_mode = #tpu.pipeline_mode<synchronous>, transform_indices = @transform_12, window_bounds = array<i64: 3, 128, 192>}, {pipeline_mode = #tpu.pipeline_mode<synchronous>, transform_indices = @transform_13, window_bounds = array<i64: 2, 192>}, {pipeline_mode = #tpu.pipeline_mode<synchronous>, transform_indices = @transform_14, window_bounds = array<i64: 192, 128>}, {transform_indices = @transform_15, window_bounds = array<i64: 1, 8, 192>}, {transform_indices = @transform_16, window_bounds = array<i64: 1, 8, 128>}]} {
    %c0 = arith.constant 0 : index
    %c0_0 = arith.constant 0 : index
    %c0_1 = arith.constant 0 : index
    %0 = vector.load %arg1[%c0, %c0_0, %c0_1] : memref<1x16x256xbf16, #tpu.memory_space<vmem>>, vector<1x16x256xbf16>
    %1 = vector.shape_cast %0 : vector<1x16x256xbf16> to vector<16x256xbf16>
    %2 = vector.shape_cast %1 : vector<16x256xbf16> to vector<8x2x256xbf16>
    %3 = vector.extract_strided_slice %2 {offsets = [0, 0, 0], sizes = [8, 1, 256], strides = [1, 1, 1]} : vector<8x2x256xbf16> to vector<8x1x256xbf16>
    %4 = vector.shape_cast %3 : vector<8x1x256xbf16> to vector<8x256xbf16>
    %5 = vector.extract_strided_slice %2 {offsets = [0, 1, 0], sizes = [8, 1, 256], strides = [1, 1, 1]} : vector<8x2x256xbf16> to vector<8x1x256xbf16>
    %6 = vector.shape_cast %5 : vector<8x1x256xbf16> to vector<8x256xbf16>
    %7 = arith.maximumf %4, %6 : vector<8x256xbf16>
    %8 = vector.extract_strided_slice %7 {offsets = [0, 16], sizes = [8, 240], strides = [1, 1]} : vector<8x256xbf16> to vector<8x240xbf16>
    %9 = vector.extract_strided_slice %7 {offsets = [0, 0], sizes = [8, 16], strides = [1, 1]} : vector<8x256xbf16> to vector<8x16xbf16>
    %10 = tpu.concatenate %8, %9 in 1 : vector<8x240xbf16>, vector<8x16xbf16> -> vector<8x256xbf16>
    %11 = arith.maximumf %7, %10 : vector<8x256xbf16>
    %cst = arith.constant 0.000000e+00 : bf16
    %12 = vector.broadcast %cst : bf16 to vector<1x256xbf16>
    %13 = vector.extract_strided_slice %11 {offsets = [0, 0], sizes = [7, 256], strides = [1, 1]} : vector<8x256xbf16> to vector<7x256xbf16>
    %14 = tpu.concatenate %12, %13 in 0 : vector<1x256xbf16>, vector<7x256xbf16> -> vector<8x256xbf16>
    %15 = vector.extract_strided_slice %11 {offsets = [1, 0], sizes = [7, 256], strides = [1, 1]} : vector<8x256xbf16> to vector<7x256xbf16>
    %16 = tpu.concatenate %15, %12 in 0 : vector<7x256xbf16>, vector<1x256xbf16> -> vector<8x256xbf16>
    %c0_2 = arith.constant 0 : index
    %c0_3 = arith.constant 0 : index
    %c0_4 = arith.constant 0 : index
    %17 = vector.load %arg3[%c0_2, %c0_3, %c0_4] : memref<3x256x128xbf16, #tpu.memory_space<vmem>>, vector<1x256x128xbf16>
    %18 = vector.shape_cast %17 : vector<1x256x128xbf16> to vector<256x128xbf16>
    %cst_5 = arith.constant dense<0.000000e+00> : vector<8x128xf32>
    %19 = tpu.matmul %14, %18, %cst_5 {dimension_numbers = #tpu.dot_dimension_numbers<[1], [0], [0], [1], [0, 0, 1, 1], [], []>} : vector<8x256xbf16>, vector<256x128xbf16>, vector<8x128xf32> -> vector<8x128xf32>
    %c1 = arith.constant 1 : index
    %c0_6 = arith.constant 0 : index
    %c0_7 = arith.constant 0 : index
    %20 = vector.load %arg3[%c1, %c0_6, %c0_7] : memref<3x256x128xbf16, #tpu.memory_space<vmem>>, vector<1x256x128xbf16>
    %21 = vector.shape_cast %20 : vector<1x256x128xbf16> to vector<256x128xbf16>
    %cst_8 = arith.constant dense<0.000000e+00> : vector<8x128xf32>
    %22 = tpu.matmul %11, %21, %cst_8 {dimension_numbers = #tpu.dot_dimension_numbers<[1], [0], [0], [1], [0, 0, 1, 1], [], []>} : vector<8x256xbf16>, vector<256x128xbf16>, vector<8x128xf32> -> vector<8x128xf32>
    %23 = arith.addf %19, %22 : vector<8x128xf32>
    %c2 = arith.constant 2 : index
    %c0_9 = arith.constant 0 : index
    %c0_10 = arith.constant 0 : index
    %24 = vector.load %arg3[%c2, %c0_9, %c0_10] : memref<3x256x128xbf16, #tpu.memory_space<vmem>>, vector<1x256x128xbf16>
    %25 = vector.shape_cast %24 : vector<1x256x128xbf16> to vector<256x128xbf16>
    %cst_11 = arith.constant dense<0.000000e+00> : vector<8x128xf32>
    %26 = tpu.matmul %16, %25, %cst_11 {dimension_numbers = #tpu.dot_dimension_numbers<[1], [0], [0], [1], [0, 0, 1, 1], [], []>} : vector<8x256xbf16>, vector<256x128xbf16>, vector<8x128xf32> -> vector<8x128xf32>
    %27 = arith.addf %23, %26 : vector<8x128xf32>
    %c0_12 = arith.constant 0 : index
    %c0_13 = arith.constant 0 : index
    %28 = vector.load %arg4[%c0_12, %c0_13] : memref<2x128xf32, #tpu.memory_space<vmem>>, vector<1x128xf32>
    %29 = vector.broadcast %28 : vector<1x128xf32> to vector<8x128xf32>
    %30 = arith.mulf %27, %29 : vector<8x128xf32>
    %c1_14 = arith.constant 1 : index
    %c0_15 = arith.constant 0 : index
    %31 = vector.load %arg4[%c1_14, %c0_15] : memref<2x128xf32, #tpu.memory_space<vmem>>, vector<1x128xf32>
    %32 = vector.broadcast %31 : vector<1x128xf32> to vector<8x128xf32>
    %33 = arith.addf %30, %32 : vector<8x128xf32>
    %cst_16 = arith.constant 0.000000e+00 : f32
    %34 = vector.broadcast %cst_16 : f32 to vector<8x128xf32>
    %35 = arith.maximumf %33, %34 : vector<8x128xf32>
    %36 = arith.truncf %35 : vector<8x128xf32> to vector<8x128xbf16>
    %cst_17 = arith.constant 0.000000e+00 : bf16
    %37 = vector.broadcast %cst_17 : bf16 to vector<1x128xbf16>
    %38 = vector.extract_strided_slice %36 {offsets = [0, 0], sizes = [7, 128], strides = [1, 1]} : vector<8x128xbf16> to vector<7x128xbf16>
    %39 = tpu.concatenate %37, %38 in 0 : vector<1x128xbf16>, vector<7x128xbf16> -> vector<8x128xbf16>
    %40 = vector.extract_strided_slice %36 {offsets = [1, 0], sizes = [7, 128], strides = [1, 1]} : vector<8x128xbf16> to vector<7x128xbf16>
    %41 = tpu.concatenate %40, %37 in 0 : vector<7x128xbf16>, vector<1x128xbf16> -> vector<8x128xbf16>
    %c0_18 = arith.constant 0 : index
    %c0_19 = arith.constant 0 : index
    %c0_20 = arith.constant 0 : index
    %42 = vector.load %arg5[%c0_18, %c0_19, %c0_20] : memref<3x128x128xbf16, #tpu.memory_space<vmem>>, vector<1x128x128xbf16>
    %43 = vector.shape_cast %42 : vector<1x128x128xbf16> to vector<128x128xbf16>
    %cst_21 = arith.constant dense<0.000000e+00> : vector<8x128xf32>
    %44 = tpu.matmul %39, %43, %cst_21 {dimension_numbers = #tpu.dot_dimension_numbers<[1], [0], [0], [1], [0, 0, 1, 1], [], []>} : vector<8x128xbf16>, vector<128x128xbf16>, vector<8x128xf32> -> vector<8x128xf32>
    %c1_22 = arith.constant 1 : index
    %c0_23 = arith.constant 0 : index
    %c0_24 = arith.constant 0 : index
    %45 = vector.load %arg5[%c1_22, %c0_23, %c0_24] : memref<3x128x128xbf16, #tpu.memory_space<vmem>>, vector<1x128x128xbf16>
    %46 = vector.shape_cast %45 : vector<1x128x128xbf16> to vector<128x128xbf16>
    %cst_25 = arith.constant dense<0.000000e+00> : vector<8x128xf32>
    %47 = tpu.matmul %36, %46, %cst_25 {dimension_numbers = #tpu.dot_dimension_numbers<[1], [0], [0], [1], [0, 0, 1, 1], [], []>} : vector<8x128xbf16>, vector<128x128xbf16>, vector<8x128xf32> -> vector<8x128xf32>
    %48 = arith.addf %44, %47 : vector<8x128xf32>
    %c2_26 = arith.constant 2 : index
    %c0_27 = arith.constant 0 : index
    %c0_28 = arith.constant 0 : index
    %49 = vector.load %arg5[%c2_26, %c0_27, %c0_28] : memref<3x128x128xbf16, #tpu.memory_space<vmem>>, vector<1x128x128xbf16>
    %50 = vector.shape_cast %49 : vector<1x128x128xbf16> to vector<128x128xbf16>
    %cst_29 = arith.constant dense<0.000000e+00> : vector<8x128xf32>
    %51 = tpu.matmul %41, %50, %cst_29 {dimension_numbers = #tpu.dot_dimension_numbers<[1], [0], [0], [1], [0, 0, 1, 1], [], []>} : vector<8x128xbf16>, vector<128x128xbf16>, vector<8x128xf32> -> vector<8x128xf32>
    %52 = arith.addf %48, %51 : vector<8x128xf32>
    %c0_30 = arith.constant 0 : index
    %c0_31 = arith.constant 0 : index
    %53 = vector.load %arg6[%c0_30, %c0_31] : memref<2x128xf32, #tpu.memory_space<vmem>>, vector<1x128xf32>
    %54 = vector.broadcast %53 : vector<1x128xf32> to vector<8x128xf32>
    %55 = arith.mulf %52, %54 : vector<8x128xf32>
    %c1_32 = arith.constant 1 : index
    %c0_33 = arith.constant 0 : index
    %56 = vector.load %arg6[%c1_32, %c0_33] : memref<2x128xf32, #tpu.memory_space<vmem>>, vector<1x128xf32>
    %57 = vector.broadcast %56 : vector<1x128xf32> to vector<8x128xf32>
    %58 = arith.addf %55, %57 : vector<8x128xf32>
    %cst_34 = arith.constant 0.000000e+00 : f32
    %59 = vector.broadcast %cst_34 : f32 to vector<8x128xf32>
    %60 = arith.maximumf %58, %59 : vector<8x128xf32>
    %c0_35 = arith.constant 0 : index
    %c0_36 = arith.constant 0 : index
    %c0_37 = arith.constant 0 : index
    %61 = vector.load %arg17[%c0_35, %c0_36, %c0_37] : memref<1x8x128xf32, #tpu.memory_space<vmem>>, vector<1x8x128xf32>
    %62 = vector.shape_cast %61 : vector<1x8x128xf32> to vector<8x128xf32>
    %63 = vector.shape_cast %60 : vector<8x128xf32> to vector<1x8x128xf32>
    tpu.vector_store %arg17[%c0_35, %c0_36, %c0_37], %63 {strides = array<i32>} : memref<1x8x128xf32, #tpu.memory_space<vmem>>, vector<1x8x128xf32>,
    %c0_38 = arith.constant 0 : index
    %c0_39 = arith.constant 0 : index
    %c0_40 = arith.constant 0 : index
    %64 = vector.load %arg2[%c0_38, %c0_39, %c0_40] : memref<1x16x256xbf16, #tpu.memory_space<vmem>>, vector<1x16x256xbf16>
    %65 = vector.shape_cast %64 : vector<1x16x256xbf16> to vector<16x256xbf16>
    %66 = arith.addf %1, %65 : vector<16x256xbf16>
    %67 = vector.shape_cast %66 : vector<16x256xbf16> to vector<8x2x256xbf16>
    %68 = vector.extract_strided_slice %67 {offsets = [0, 0, 0], sizes = [8, 1, 256], strides = [1, 1, 1]} : vector<8x2x256xbf16> to vector<8x1x256xbf16>
    %69 = vector.shape_cast %68 : vector<8x1x256xbf16> to vector<8x256xbf16>
    %70 = vector.extract_strided_slice %67 {offsets = [0, 1, 0], sizes = [8, 1, 256], strides = [1, 1, 1]} : vector<8x2x256xbf16> to vector<8x1x256xbf16>
    %71 = vector.shape_cast %70 : vector<8x1x256xbf16> to vector<8x256xbf16>
    %cst_41 = arith.constant 0.000000e+00 : bf16
    %72 = vector.broadcast %cst_41 : bf16 to vector<1x256xbf16>
    %73 = vector.extract_strided_slice %71 {offsets = [0, 0], sizes = [7, 256], strides = [1, 1]} : vector<8x256xbf16> to vector<7x256xbf16>
    %74 = tpu.concatenate %72, %73 in 0 : vector<1x256xbf16>, vector<7x256xbf16> -> vector<8x256xbf16>
    %c0_42 = arith.constant 0 : index
    %c0_43 = arith.constant 0 : index
    %c0_44 = arith.constant 0 : index
    %75 = vector.load %arg7[%c0_42, %c0_43, %c0_44] : memref<3x256x128xbf16, #tpu.memory_space<vmem>>, vector<1x256x128xbf16>
    %76 = vector.shape_cast %75 : vector<1x256x128xbf16> to vector<256x128xbf16>
    %cst_45 = arith.constant dense<0.000000e+00> : vector<8x128xf32>
    %77 = tpu.matmul %74, %76, %cst_45 {dimension_numbers = #tpu.dot_dimension_numbers<[1], [0], [0], [1], [0, 0, 1, 1], [], []>} : vector<8x256xbf16>, vector<256x128xbf16>, vector<8x128xf32> -> vector<8x128xf32>
    %c1_46 = arith.constant 1 : index
    %c0_47 = arith.constant 0 : index
    %c0_48 = arith.constant 0 : index
    %78 = vector.load %arg7[%c1_46, %c0_47, %c0_48] : memref<3x256x128xbf16, #tpu.memory_space<vmem>>, vector<1x256x128xbf16>
    %79 = vector.shape_cast %78 : vector<1x256x128xbf16> to vector<256x128xbf16>
    %cst_49 = arith.constant dense<0.000000e+00> : vector<8x128xf32>
    %80 = tpu.matmul %69, %79, %cst_49 {dimension_numbers = #tpu.dot_dimension_numbers<[1], [0], [0], [1], [0, 0, 1, 1], [], []>} : vector<8x256xbf16>, vector<256x128xbf16>, vector<8x128xf32> -> vector<8x128xf32>
    %81 = arith.addf %77, %80 : vector<8x128xf32>
    %c2_50 = arith.constant 2 : index
    %c0_51 = arith.constant 0 : index
    %c0_52 = arith.constant 0 : index
    %82 = vector.load %arg7[%c2_50, %c0_51, %c0_52] : memref<3x256x128xbf16, #tpu.memory_space<vmem>>, vector<1x256x128xbf16>
    %83 = vector.shape_cast %82 : vector<1x256x128xbf16> to vector<256x128xbf16>
    %cst_53 = arith.constant dense<0.000000e+00> : vector<8x128xf32>
    %84 = tpu.matmul %71, %83, %cst_53 {dimension_numbers = #tpu.dot_dimension_numbers<[1], [0], [0], [1], [0, 0, 1, 1], [], []>} : vector<8x256xbf16>, vector<256x128xbf16>, vector<8x128xf32> -> vector<8x128xf32>
    %85 = arith.addf %81, %84 : vector<8x128xf32>
    %c0_54 = arith.constant 0 : index
    %c0_55 = arith.constant 0 : index
    %86 = vector.load %arg8[%c0_54, %c0_55] : memref<2x128xf32, #tpu.memory_space<vmem>>, vector<1x128xf32>
    %87 = vector.broadcast %86 : vector<1x128xf32> to vector<8x128xf32>
    %88 = arith.mulf %85, %87 : vector<8x128xf32>
    %c1_56 = arith.constant 1 : index
    %c0_57 = arith.constant 0 : index
    %89 = vector.load %arg8[%c1_56, %c0_57] : memref<2x128xf32, #tpu.memory_space<vmem>>, vector<1x128xf32>
    %90 = vector.broadcast %89 : vector<1x128xf32> to vector<8x128xf32>
    %91 = arith.addf %88, %90 : vector<8x128xf32>
    %92 = arith.truncf %91 : vector<8x128xf32> to vector<8x128xbf16>
    %cst_58 = arith.constant 0.000000e+00 : bf16
    %93 = vector.broadcast %cst_58 : bf16 to vector<1x128xbf16>
    %94 = vector.extract_strided_slice %92 {offsets = [0, 0], sizes = [7, 128], strides = [1, 1]} : vector<8x128xbf16> to vector<7x128xbf16>
    %95 = tpu.concatenate %93, %94 in 0 : vector<1x128xbf16>, vector<7x128xbf16> -> vector<8x128xbf16>
    %96 = vector.extract_strided_slice %92 {offsets = [1, 0], sizes = [7, 128], strides = [1, 1]} : vector<8x128xbf16> to vector<7x128xbf16>
    %97 = tpu.concatenate %96, %93 in 0 : vector<7x128xbf16>, vector<1x128xbf16> -> vector<8x128xbf16>
    %c0_59 = arith.constant 0 : index
    %c0_60 = arith.constant 0 : index
    %c0_61 = arith.constant 0 : index
    %98 = vector.load %arg9[%c0_59, %c0_60, %c0_61] : memref<3x128x128xbf16, #tpu.memory_space<vmem>>, vector<1x128x128xbf16>
    %99 = vector.shape_cast %98 : vector<1x128x128xbf16> to vector<128x128xbf16>
    %cst_62 = arith.constant dense<0.000000e+00> : vector<8x128xf32>
    %100 = tpu.matmul %95, %99, %cst_62 {dimension_numbers = #tpu.dot_dimension_numbers<[1], [0], [0], [1], [0, 0, 1, 1], [], []>} : vector<8x128xbf16>, vector<128x128xbf16>, vector<8x128xf32> -> vector<8x128xf32>
    %c1_63 = arith.constant 1 : index
    %c0_64 = arith.constant 0 : index
    %c0_65 = arith.constant 0 : index
    %101 = vector.load %arg9[%c1_63, %c0_64, %c0_65] : memref<3x128x128xbf16, #tpu.memory_space<vmem>>, vector<1x128x128xbf16>
    %102 = vector.shape_cast %101 : vector<1x128x128xbf16> to vector<128x128xbf16>
    %cst_66 = arith.constant dense<0.000000e+00> : vector<8x128xf32>
    %103 = tpu.matmul %92, %102, %cst_66 {dimension_numbers = #tpu.dot_dimension_numbers<[1], [0], [0], [1], [0, 0, 1, 1], [], []>} : vector<8x128xbf16>, vector<128x128xbf16>, vector<8x128xf32> -> vector<8x128xf32>
    %104 = arith.addf %100, %103 : vector<8x128xf32>
    %c2_67 = arith.constant 2 : index
    %c0_68 = arith.constant 0 : index
    %c0_69 = arith.constant 0 : index
    %105 = vector.load %arg9[%c2_67, %c0_68, %c0_69] : memref<3x128x128xbf16, #tpu.memory_space<vmem>>, vector<1x128x128xbf16>
    %106 = vector.shape_cast %105 : vector<1x128x128xbf16> to vector<128x128xbf16>
    %cst_70 = arith.constant dense<0.000000e+00> : vector<8x128xf32>
    %107 = tpu.matmul %97, %106, %cst_70 {dimension_numbers = #tpu.dot_dimension_numbers<[1], [0], [0], [1], [0, 0, 1, 1], [], []>} : vector<8x128xbf16>, vector<128x128xbf16>, vector<8x128xf32> -> vector<8x128xf32>
    %108 = arith.addf %104, %107 : vector<8x128xf32>
    %c0_71 = arith.constant 0 : index
    %c0_72 = arith.constant 0 : index
    %109 = vector.load %arg10[%c0_71, %c0_72] : memref<2x128xf32, #tpu.memory_space<vmem>>, vector<1x128xf32>
    %110 = vector.broadcast %109 : vector<1x128xf32> to vector<8x128xf32>
    %111 = arith.mulf %108, %110 : vector<8x128xf32>
    %c1_73 = arith.constant 1 : index
    %c0_74 = arith.constant 0 : index
    %112 = vector.load %arg10[%c1_73, %c0_74] : memref<2x128xf32, #tpu.memory_space<vmem>>, vector<1x128xf32>
    %113 = vector.broadcast %112 : vector<1x128xf32> to vector<8x128xf32>
    %114 = arith.addf %111, %113 : vector<8x128xf32>
    %cst_75 = arith.constant 0.000000e+00 : f32
    %115 = vector.broadcast %cst_75 : f32 to vector<8x128xf32>
    %116 = arith.maximumf %114, %115 : vector<8x128xf32>
    %117 = arith.truncf %116 : vector<8x128xf32> to vector<8x128xbf16>
    %cst_76 = arith.constant 0.000000e+00 : bf16
    %118 = vector.broadcast %cst_76 : bf16 to vector<1x128xbf16>
    %119 = vector.extract_strided_slice %117 {offsets = [0, 0], sizes = [7, 128], strides = [1, 1]} : vector<8x128xbf16> to vector<7x128xbf16>
    %120 = tpu.concatenate %118, %119 in 0 : vector<1x128xbf16>, vector<7x128xbf16> -> vector<8x128xbf16>
    %121 = vector.extract_strided_slice %117 {offsets = [1, 0], sizes = [7, 128], strides = [1, 1]} : vector<8x128xbf16> to vector<7x128xbf16>
    %122 = tpu.concatenate %121, %118 in 0 : vector<7x128xbf16>, vector<1x128xbf16> -> vector<8x128xbf16>
    %c0_77 = arith.constant 0 : index
    %c0_78 = arith.constant 0 : index
    %c0_79 = arith.constant 0 : index
    %123 = vector.load %arg11[%c0_77, %c0_78, %c0_79] : memref<3x128x128xbf16, #tpu.memory_space<vmem>>, vector<1x128x128xbf16>
    %124 = vector.shape_cast %123 : vector<1x128x128xbf16> to vector<128x128xbf16>
    %cst_80 = arith.constant dense<0.000000e+00> : vector<8x128xf32>
    %125 = tpu.matmul %120, %124, %cst_80 {dimension_numbers = #tpu.dot_dimension_numbers<[1], [0], [0], [1], [0, 0, 1, 1], [], []>} : vector<8x128xbf16>, vector<128x128xbf16>, vector<8x128xf32> -> vector<8x128xf32>
    %c1_81 = arith.constant 1 : index
    %c0_82 = arith.constant 0 : index
    %c0_83 = arith.constant 0 : index
    %126 = vector.load %arg11[%c1_81, %c0_82, %c0_83] : memref<3x128x128xbf16, #tpu.memory_space<vmem>>, vector<1x128x128xbf16>
    %127 = vector.shape_cast %126 : vector<1x128x128xbf16> to vector<128x128xbf16>
    %cst_84 = arith.constant dense<0.000000e+00> : vector<8x128xf32>
    %128 = tpu.matmul %117, %127, %cst_84 {dimension_numbers = #tpu.dot_dimension_numbers<[1], [0], [0], [1], [0, 0, 1, 1], [], []>} : vector<8x128xbf16>, vector<128x128xbf16>, vector<8x128xf32> -> vector<8x128xf32>
    %129 = arith.addf %125, %128 : vector<8x128xf32>
    %c2_85 = arith.constant 2 : index
    %c0_86 = arith.constant 0 : index
    %c0_87 = arith.constant 0 : index
    %130 = vector.load %arg11[%c2_85, %c0_86, %c0_87] : memref<3x128x128xbf16, #tpu.memory_space<vmem>>, vector<1x128x128xbf16>
    %131 = vector.shape_cast %130 : vector<1x128x128xbf16> to vector<128x128xbf16>
    %cst_88 = arith.constant dense<0.000000e+00> : vector<8x128xf32>
    %132 = tpu.matmul %122, %131, %cst_88 {dimension_numbers = #tpu.dot_dimension_numbers<[1], [0], [0], [1], [0, 0, 1, 1], [], []>} : vector<8x128xbf16>, vector<128x128xbf16>, vector<8x128xf32> -> vector<8x128xf32>
    %133 = arith.addf %129, %132 : vector<8x128xf32>
    %c0_89 = arith.constant 0 : index
    %c0_90 = arith.constant 0 : index
    %134 = vector.load %arg12[%c0_89, %c0_90] : memref<2x128xf32, #tpu.memory_space<vmem>>, vector<1x128xf32>
    %135 = vector.broadcast %134 : vector<1x128xf32> to vector<8x128xf32>
    %136 = arith.mulf %133, %135 : vector<8x128xf32>
    %c1_91 = arith.constant 1 : index
    %c0_92 = arith.constant 0 : index
    %137 = vector.load %arg12[%c1_91, %c0_92] : memref<2x128xf32, #tpu.memory_space<vmem>>, vector<1x128xf32>
    %138 = vector.broadcast %137 : vector<1x128xf32> to vector<8x128xf32>
    %139 = arith.addf %136, %138 : vector<8x128xf32>
    %cst_93 = arith.constant 0.000000e+00 : f32
    %140 = vector.broadcast %cst_93 : f32 to vector<8x128xf32>
    %141 = arith.maximumf %139, %140 : vector<8x128xf32>
    %142 = arith.truncf %141 : vector<8x128xf32> to vector<8x128xbf16>
    %cst_94 = arith.constant 0.000000e+00 : bf16
    %143 = vector.broadcast %cst_94 : bf16 to vector<1x128xbf16>
    %144 = vector.extract_strided_slice %142 {offsets = [0, 0], sizes = [7, 128], strides = [1, 1]} : vector<8x128xbf16> to vector<7x128xbf16>
    %145 = tpu.concatenate %143, %144 in 0 : vector<1x128xbf16>, vector<7x128xbf16> -> vector<8x128xbf16>
    %146 = vector.extract_strided_slice %142 {offsets = [1, 0], sizes = [7, 128], strides = [1, 1]} : vector<8x128xbf16> to vector<7x128xbf16>
    %147 = tpu.concatenate %146, %143 in 0 : vector<7x128xbf16>, vector<1x128xbf16> -> vector<8x128xbf16>
    %c0_95 = arith.constant 0 : index
    %c0_96 = arith.constant 0 : index
    %c0_97 = arith.constant 0 : index
    %148 = vector.load %arg13[%c0_95, %c0_96, %c0_97] : memref<3x128x192xbf16, #tpu.memory_space<vmem>>, vector<1x128x192xbf16>
    %149 = vector.shape_cast %148 : vector<1x128x192xbf16> to vector<128x192xbf16>
    %cst_98 = arith.constant dense<0.000000e+00> : vector<8x192xf32>
    %150 = tpu.matmul %145, %149, %cst_98 {dimension_numbers = #tpu.dot_dimension_numbers<[1], [0], [0], [1], [0, 0, 1, 1], [], []>} : vector<8x128xbf16>, vector<128x192xbf16>, vector<8x192xf32> -> vector<8x192xf32>
    %c1_99 = arith.constant 1 : index
    %c0_100 = arith.constant 0 : index
    %c0_101 = arith.constant 0 : index
    %151 = vector.load %arg13[%c1_99, %c0_100, %c0_101] : memref<3x128x192xbf16, #tpu.memory_space<vmem>>, vector<1x128x192xbf16>
    %152 = vector.shape_cast %151 : vector<1x128x192xbf16> to vector<128x192xbf16>
    %cst_102 = arith.constant dense<0.000000e+00> : vector<8x192xf32>
    %153 = tpu.matmul %142, %152, %cst_102 {dimension_numbers = #tpu.dot_dimension_numbers<[1], [0], [0], [1], [0, 0, 1, 1], [], []>} : vector<8x128xbf16>, vector<128x192xbf16>, vector<8x192xf32> -> vector<8x192xf32>
    %154 = arith.addf %150, %153 : vector<8x192xf32>
    %c2_103 = arith.constant 2 : index
    %c0_104 = arith.constant 0 : index
    %c0_105 = arith.constant 0 : index
    %155 = vector.load %arg13[%c2_103, %c0_104, %c0_105] : memref<3x128x192xbf16, #tpu.memory_space<vmem>>, vector<1x128x192xbf16>
    %156 = vector.shape_cast %155 : vector<1x128x192xbf16> to vector<128x192xbf16>
    %cst_106 = arith.constant dense<0.000000e+00> : vector<8x192xf32>
    %157 = tpu.matmul %147, %156, %cst_106 {dimension_numbers = #tpu.dot_dimension_numbers<[1], [0], [0], [1], [0, 0, 1, 1], [], []>} : vector<8x128xbf16>, vector<128x192xbf16>, vector<8x192xf32> -> vector<8x192xf32>
    %158 = arith.addf %154, %157 : vector<8x192xf32>
    %c0_107 = arith.constant 0 : index
    %c0_108 = arith.constant 0 : index
    %159 = vector.load %arg14[%c0_107, %c0_108] : memref<2x192xf32, #tpu.memory_space<vmem>>, vector<1x192xf32>
    %160 = vector.broadcast %159 : vector<1x192xf32> to vector<8x192xf32>
    %161 = arith.mulf %158, %160 : vector<8x192xf32>
    %c1_109 = arith.constant 1 : index
    %c0_110 = arith.constant 0 : index
    %162 = vector.load %arg14[%c1_109, %c0_110] : memref<2x192xf32, #tpu.memory_space<vmem>>, vector<1x192xf32>
    %163 = vector.broadcast %162 : vector<1x192xf32> to vector<8x192xf32>
    %164 = arith.addf %161, %163 : vector<8x192xf32>
    %c0_111 = arith.constant 0 : index
    %c0_112 = arith.constant 0 : index
    %c0_113 = arith.constant 0 : index
    %165 = vector.load %arg16[%c0_111, %c0_112, %c0_113] : memref<1x8x192xf32, #tpu.memory_space<vmem>>, vector<1x8x192xf32>
    %166 = vector.shape_cast %165 : vector<1x8x192xf32> to vector<8x192xf32>
    %167 = vector.shape_cast %164 : vector<8x192xf32> to vector<1x8x192xf32>
    tpu.vector_store %arg16[%c0_111, %c0_112, %c0_113], %167 {strides = array<i32>} : memref<1x8x192xf32, #tpu.memory_space<vmem>>, vector<1x8x192xf32>,
    %c0_114 = arith.constant 0 : index
    %c0_115 = arith.constant 0 : index
    %c0_116 = arith.constant 0 : index
    %168 = vector.load %arg17[%c0_114, %c0_115, %c0_116] : memref<1x8x128xf32, #tpu.memory_space<vmem>>, vector<1x8x128xf32>
    %169 = vector.shape_cast %168 : vector<1x8x128xf32> to vector<8x128xf32>
    %c0_117 = arith.constant 0 : index
    %c0_118 = arith.constant 0 : index
    %170 = vector.load %arg15[%c0_117, %c0_118] : memref<192x128xf32, #tpu.memory_space<vmem>>, vector<192x128xf32>
    %cst_119 = arith.constant dense<0.000000e+00> : vector<8x128xf32>
    %171 = tpu.matmul %164, %170, %cst_119 {dimension_numbers = #tpu.dot_dimension_numbers<[1], [0], [0], [1], [0, 0, 1, 1], [], []>} : vector<8x192xf32>, vector<192x128xf32>, vector<8x128xf32> -> vector<8x128xf32>
    %172 = arith.addf %169, %171 : vector<8x128xf32>
    %c0_120 = arith.constant 0 : index
    %c0_121 = arith.constant 0 : index
    %c0_122 = arith.constant 0 : index
    %173 = vector.load %arg17[%c0_120, %c0_121, %c0_122] : memref<1x8x128xf32, #tpu.memory_space<vmem>>, vector<1x8x128xf32>
    %174 = vector.shape_cast %173 : vector<1x8x128xf32> to vector<8x128xf32>
    %175 = vector.shape_cast %172 : vector<8x128xf32> to vector<1x8x128xf32>
    tpu.vector_store %arg17[%c0_120, %c0_121, %c0_122], %175 {strides = array<i32>} : memref<1x8x128xf32, #tpu.memory_space<vmem>>, vector<1x8x128xf32>,
    return
  }
  func.func @transform_0(%arg0: i32) -> (i32, i32, i32) {
    %c0_i32 = arith.constant 0 : i32
    %c0_i32_0 = arith.constant 0 : i32
    %c0_i32_1 = arith.constant 0 : i32
    return %arg0, %c0_i32, %c0_i32_0 : i32, i32, i32
  }
  func.func @transform_1(%arg0: i32) -> (i32, i32, i32) {
    %c0_i32 = arith.constant 0 : i32
    %c0_i32_0 = arith.constant 0 : i32
    %c0_i32_1 = arith.constant 0 : i32
    return %arg0, %c0_i32, %c0_i32_0 : i32, i32, i32
  }
  func.func @transform_2(%arg0: i32) -> (i32, i32, i32) {
    %c0_i32 = arith.constant 0 : i32
    %c0_i32_0 = arith.constant 0 : i32
    %c0_i32_1 = arith.constant 0 : i32
    %c0_i32_2 = arith.constant 0 : i32
    return %c0_i32, %c0_i32_0, %c0_i32_1 : i32, i32, i32
  }
  func.func @transform_3(%arg0: i32) -> (i32, i32) {
    %c0_i32 = arith.constant 0 : i32
    %c0_i32_0 = arith.constant 0 : i32
    %c0_i32_1 = arith.constant 0 : i32
    return %c0_i32, %c0_i32_0 : i32, i32
  }
  func.func @transform_4(%arg0: i32) -> (i32, i32, i32) {
    %c0_i32 = arith.constant 0 : i32
    %c0_i32_0 = arith.constant 0 : i32
    %c0_i32_1 = arith.constant 0 : i32
    %c0_i32_2 = arith.constant 0 : i32
    return %c0_i32, %c0_i32_0, %c0_i32_1 : i32, i32, i32
  }
  func.func @transform_5(%arg0: i32) -> (i32, i32) {
    %c0_i32 = arith.constant 0 : i32
    %c0_i32_0 = arith.constant 0 : i32
    %c0_i32_1 = arith.constant 0 : i32
    return %c0_i32, %c0_i32_0 : i32, i32
  }
  func.func @transform_6(%arg0: i32) -> (i32, i32, i32) {
    %c0_i32 = arith.constant 0 : i32
    %c0_i32_0 = arith.constant 0 : i32
    %c0_i32_1 = arith.constant 0 : i32
    %c0_i32_2 = arith.constant 0 : i32
    return %c0_i32, %c0_i32_0, %c0_i32_1 : i32, i32, i32
  }
  func.func @transform_7(%arg0: i32) -> (i32, i32) {
    %c0_i32 = arith.constant 0 : i32
    %c0_i32_0 = arith.constant 0 : i32
    %c0_i32_1 = arith.constant 0 : i32
    return %c0_i32, %c0_i32_0 : i32, i32
  }
  func.func @transform_8(%arg0: i32) -> (i32, i32, i32) {
    %c0_i32 = arith.constant 0 : i32
    %c0_i32_0 = arith.constant 0 : i32
    %c0_i32_1 = arith.constant 0 : i32
    %c0_i32_2 = arith.constant 0 : i32
    return %c0_i32, %c0_i32_0, %c0_i32_1 : i32, i32, i32
  }
  func.func @transform_9(%arg0: i32) -> (i32, i32) {
    %c0_i32 = arith.constant 0 : i32
    %c0_i32_0 = arith.constant 0 : i32
    %c0_i32_1 = arith.constant 0 : i32
    return %c0_i32, %c0_i32_0 : i32, i32
  }
  func.func @transform_10(%arg0: i32) -> (i32, i32, i32) {
    %c0_i32 = arith.constant 0 : i32
    %c0_i32_0 = arith.constant 0 : i32
    %c0_i32_1 = arith.constant 0 : i32
    %c0_i32_2 = arith.constant 0 : i32
    return %c0_i32, %c0_i32_0, %c0_i32_1 : i32, i32, i32
  }
  func.func @transform_11(%arg0: i32) -> (i32, i32) {
    %c0_i32 = arith.constant 0 : i32
    %c0_i32_0 = arith.constant 0 : i32
    %c0_i32_1 = arith.constant 0 : i32
    return %c0_i32, %c0_i32_0 : i32, i32
  }
  func.func @transform_12(%arg0: i32) -> (i32, i32, i32) {
    %c0_i32 = arith.constant 0 : i32
    %c0_i32_0 = arith.constant 0 : i32
    %c0_i32_1 = arith.constant 0 : i32
    %c0_i32_2 = arith.constant 0 : i32
    return %c0_i32, %c0_i32_0, %c0_i32_1 : i32, i32, i32
  }
  func.func @transform_13(%arg0: i32) -> (i32, i32) {
    %c0_i32 = arith.constant 0 : i32
    %c0_i32_0 = arith.constant 0 : i32
    %c0_i32_1 = arith.constant 0 : i32
    return %c0_i32, %c0_i32_0 : i32, i32
  }
  func.func @transform_14(%arg0: i32) -> (i32, i32) {
    %c0_i32 = arith.constant 0 : i32
    %c0_i32_0 = arith.constant 0 : i32
    %c0_i32_1 = arith.constant 0 : i32
    return %c0_i32, %c0_i32_0 : i32, i32
  }
  func.func @transform_15(%arg0: i32) -> (i32, i32, i32) {
    %c0_i32 = arith.constant 0 : i32
    %c0_i32_0 = arith.constant 0 : i32
    %c0_i32_1 = arith.constant 0 : i32
    return %arg0, %c0_i32, %c0_i32_0 : i32, i32, i32
  }
  func.func @transform_16(%arg0: i32) -> (i32, i32, i32) {
    %c0_i32 = arith.constant 0 : i32
    %c0_i32_0 = arith.constant 0 : i32
    %c0_i32_1 = arith.constant 0 : i32
    return %arg0, %c0_i32, %c0_i32_0 : i32, i32, i32
  }
}

</mosaic_0001>

<bundles_post_ra>
// kernel: tpu_custom_call.1
= control target key start
LH: loop header
LB: loop body
LE: loop exit
PB: predicated region body
PF: predicated region fallthrough
CT: control target
= control target key end

     0   :  { %s7265_s0 = inlined_call_operand.vmem [shape: bf16[2,16,256], index: 0, kind: input, shape index: {}]   ;;  %s7266_s1 = inlined_call_operand.vmem [shape: bf16[2,16,256], index: 1, kind: input, shape index: {}]   ;;  %s7267_s2 = inlined_call_operand.vmem [shape: bf16[3,256,128], index: 2, kind: input, shape index: {}]   ;;  %s7268_s3 = inlined_call_operand.vmem [shape: f32[2,128], index: 3, kind: input, shape index: {}]   ;;  %s7269_s4 = inlined_call_operand.vmem [shape: bf16[3,128,128], index: 4, kind: input, shape index: {}]   ;;  %s7270_s5 = inlined_call_operand.vmem [shape: f32[2,128], index: 5, kind: input, shape index: {}]   ;;  %s7271_s6 = inlined_call_operand.hbm [shape: bf16[3,256,128], index: 6, kind: input, shape index: {}]   ;;  %s7272_s7 = inlined_call_operand.vmem [shape: f32[2,128], index: 7, kind: input, shape index: {}]   ;;  %s7273_s8 = inlined_call_operand.hbm [shape: bf16[3,128,128], index: 8, kind: input, shape index: {}]   ;;  %s7274_s9 = inlined_call_operand.vmem [shape: f32[2,128], index: 9, kind: input, shape index: {}]   ;;  %s7275_s10 = inlined_call_operand.hbm [shape: bf16[3,128,128], index: 10, kind: input, shape index: {}]   ;;  %s7276_s11 = inlined_call_operand.vmem [shape: f32[2,128], index: 11, kind: input, shape index: {}]   ;;  %s7277_s12 = inlined_call_operand.vmem [shape: bf16[3,128,192], index: 12, kind: input, shape index: {}]   ;;  %s7278_s13 = inlined_call_operand.vmem [shape: f32[2,192], index: 13, kind: input, shape index: {}]   ;;  %s7279_s14 = inlined_call_operand.hbm [shape: f32[192,128], index: 14, kind: input, shape index: {}]   ;;  %s7280_s15 = inlined_call_operand.hbm [shape: f32[2,8,192], index: 15, kind: output, shape index: {0}]   ;;  %s7281_s16 = inlined_call_operand.hbm [shape: f32[2,8,128], index: 16, kind: output, shape index: {1}]  }
   0x1   :  { %7304 = sst [smem:[#allocation25_spill]] %s7265_s0 }
   0x2   :  { %7305 = sst [smem:[#allocation26_spill]] %s7270_s5 }
   0x3   :  { %7306 = sst [smem:[#allocation27_spill]] %s7278_s13 }
   0x4   :  { %7307 = sst [smem:[#allocation28_spill]] %s7280_s15 }
   0x5   :  { %7308 = sst [smem:[#allocation29_spill]] %s7281_s16 }
   0x6   :  { %22 = vsyncpa [#allocation3], 0 }
   0x7   :  { %23 = vsyncpa [#allocation6], 0 }
   0x8   :  { %24 = vsyncpa [#allocation9], 0 }
   0x9   :  { %25 = vsyncpa [#allocation4], 0 }
   0xa   :  { %27 = vsyncpa [#allocation4 + $0x1], 0 }
   0xb   :  { %28 = vsyncpa [#allocation12], 0 }
   0xc   :  { %30 = vsyncpa [#allocation12 + $0x1], 0  ;;  %s5969_s21 = smov 0   ;;  %s5971_s22 = smov 0  }
   0xd   :  { %s5973_s23 = smov 0   ;;  %s5975_s24 = smov 0  }
   0xe LB: > { %7309 = sst [smem:[#allocation18_spill]] %s5854_s21  ;;  %s5990_s25 = sadd.s32 4294967295, %s5866_s24   ;;  %s5866_s24 = sphi %s5975_s24, %s7352_s24   ;;  %s5862_s23 = sphi %s5973_s23, %s7354_s23   ;;  %s5858_s22 = sphi %s5971_s22, %s7356_s22   ;;  %s5854_s21 = sphi %s5969_s21, %s7355_s21  }
   0xf   : > { %7310 = sst [smem:[#allocation19_spill]] %s5862_s23  ;;  %s4460_s26 = sadd.s32 4294967294, %s5866_s24  }
  0x10   : > { %7311 = sst [smem:[#allocation20_spill]] %s5866_s24  ;;  %s5994_s27 = sadd.s32 1, %s5866_s24  }
  0x11   : > { %7312 = sst [smem:[#allocation21_spill]] %s5994_s27  ;;  %s368_s28 = sadd.s32 1, %s5862_s23 }
  0x12   : > { %s365_s29 = ssub.s32 %s5866_s24, %s5994_s27  ;;  %p378_p0 = scmp.ne.s32.totalorder %s5862_s23, %s5858_s22 }
  0x13   : > { %p366_p1 = scmp.eq.s32.totalorder %s365_s29, 0  ;;  %p379_p2 = scmp.eq.s32.totalorder %s5990_s25, 1 }
  0x14   : > { %p384_p3 = scmp.ne.s32.totalorder %s5858_s22, %s5854_s21  ;;  %p385_p4 = scmp.eq.s32.totalorder %s4460_s26, 1 }
  0x15   : > { %s6005_s30 = scalar_select %p366_p1, %s5862_s23, %s368_s28  }
  0x16   : > { %p6007_p5 = por %p379_p2, %p378_p0  ;;  %p6011_p6 = por %p385_p4, %p384_p3 }
  0x17   : > { %7313 = sst [smem:[#allocation22_spill]] %s6005_s30  ;;  %p4461_p7 = scmp.ge.s32.totalorder %s5866_s24, 1 }
  0x18   : > { %s7314_s0 = scalar_select %p6007_p5, 1, 0 }
  0x19   : > { %s7316_s17 = scalar_select %p6011_p6, 1, 0 }
  0x1a   : > { %7315 = sst [smem:[#allocation23_spill]] %s7314_s0  ;;  %p418_p8 = scmp.lt.s32.totalorder %s5866_s24, 3 }
  0x1b   : > { %7317 = sst [smem:[#allocation24_spill]] %s7316_s17  ;;  %p7289_p9 = scmp.eq.s32.totalorder %s5990_s25, 0 }
  0x1c   : > { %p6018_p10 = pnand %p4461_p7, %p418_p8  ;;  %s5868_s19 = smov [#allocation5]  }
  0x1d   : > { %s458_s20 = sshll.u32 %s5868_s19, 4  ;;  %s5869_s28 = smov [#allocation2]   ;;  %s6024_s20 = int_to_ptr.vmem [resolvable:$true] %s458_s20 }
  0x1e   : > { %s7318_s18 = scalar_select %p6018_p10, 1, 0 }
  0x1f   : > { %p5333_p11 = pneg %p6018_p10  ;;  %s442_s29 = sshll.u32 %s5869_s28, 4  ;;  %s6032_s29 = int_to_ptr.vmem [resolvable:$true] %s442_s29 }
  0x20   : > { %s5870_s30 = smov [#allocation7]   ;;  %s5648_s21 = scalar_lea.hbm %s7273_s8, 3072 }
  0x21   : > { %p6028_p12 = pnand %p7289_p9, %p5333_p11  ;;  %s6034_s23 = sshll.u32 %s5870_s30, 4  ;;  %s475_s23 = int_to_ptr.vmem [resolvable:$true] %s6034_s23 }
  0x22   : > { %p5649_p13 = scmp.ne.s32.totalorder %s7273_s8, %s5648_s21  ;;  %p5655_p3 = scmp.lt.u32.totalorder %s5648_s21, %s7273_s8 }
  0x23   : > { %p6044_p0 = pneg %p6028_p12 }
  0x25   : > { %p5651_p1 = pnand %p6044_p0, %p5649_p13 }
  0x27   : > { %p5652_p2 = pneg %p5651_p1 }
  0x29   : > { %p5657_p4 = pnand %p5655_p3, %p5652_p2 }
  0x2b   : > { %5660 = shalt.err (!%p5657_p4)
}
  0x2c   : > { %s5661_s24 = scalar_lea.vmem %s6024_s20, 3072  ;;  %p5669_p9 = scmp.lt.s32.totalorder %s6024_s20, %s6024_s20 }
  0x2d   : > { %p5662_p7 = scmp.ne.s32.totalorder %s6024_s20, %s5661_s24  ;;  %p5670_p6 = scmp.lt.s32.totalorder %s5661_s24, %s5661_s24 }
  0x2f   : > { %p5664_p8 = pnand %p5662_p7, %p6044_p0  ;;  %p5671_p13 = por %p5670_p6, %p5669_p9 }
  0x31   : > { %p5665_p11 = pneg %p5664_p8 }
  0x33   : > { %p5672_p1 = pnand %p5671_p13, %p5665_p11 }
  0x35   : > { %5675 = shalt.err (!%p5672_p1)
}
  0x36   : > { %s5871_s27 = smov 64   ;;  %s5872_s21 = smov 4  }
  0x37   : > { %5339 = dma.hbm_to_vmem [thread:$0]  (!%p6028_p12), %s7273_s8, 3072, %s6024_s20, [#allocation6], %s5871_s27, %s5871_s27, %s5872_s21  }
  0x38   : > { %s5676_s24 = scalar_lea.hbm %s7271_s6, 6144 }
  0x39   : > { %p5677_p6 = scmp.ne.s32.totalorder %s7271_s6, %s5676_s24  ;;  %p5683_p3 = scmp.lt.u32.totalorder %s5676_s24, %s7271_s6 }
  0x3b   : > { %p5679_p9 = pnand %p5677_p6, %p6044_p0 }
  0x3d   : > { %p5680_p2 = pneg %p5679_p9 }
  0x3f   : > { %p5685_p4 = pnand %p5683_p3, %p5680_p2 }
  0x41   : > { %5688 = shalt.err (!%p5685_p4)
}
  0x42   : > { %s5689_s20 = scalar_lea.vmem %s6032_s29, 6144  ;;  %p5697_p13 = scmp.lt.s32.totalorder %s6032_s29, %s6032_s29 }
  0x43   : > { %p5690_p7 = scmp.ne.s32.totalorder %s6032_s29, %s5689_s20  ;;  %p5698_p1 = scmp.lt.s32.totalorder %s5689_s20, %s5689_s20 }
  0x45   : > { %p5692_p8 = pnand %p5690_p7, %p6044_p0  ;;  %p5699_p6 = por %p5698_p1, %p5697_p13 }
  0x47   : > { %p5693_p11 = pneg %p5692_p8 }
  0x49   : > { %p5700_p9 = pnand %p5699_p6, %p5693_p11 }
  0x4b   : > { %5703 = shalt.err (!%p5700_p9)
}
  0x4c   : > { %5336 = dma.hbm_to_vmem [thread:$0]  (!%p6028_p12), %s7271_s6, 6144, %s6032_s29, [#allocation3], %s5871_s27, %s5871_s27, %s5872_s21  }
  0x4d   : > { %s5704_s17 = scalar_lea.hbm %s7275_s10, 3072 }
  0x4e   : > { %p5705_p2 = scmp.ne.s32.totalorder %s7275_s10, %s5704_s17  ;;  %p5711_p7 = scmp.lt.u32.totalorder %s5704_s17, %s7275_s10 }
  0x50   : > { %p5707_p3 = pnand %p5705_p2, %p6044_p0 }
  0x52   : > { %p5708_p4 = pneg %p5707_p3 }
  0x54   : > { %p5713_p8 = pnand %p5711_p7, %p5708_p4 }
  0x56   : > { %5716 = shalt.err (!%p5713_p8)
}
  0x57   : > { %s5717_s20 = scalar_lea.vmem %s475_s23, 3072  ;;  %p5725_p6 = scmp.lt.s32.totalorder %s475_s23, %s475_s23 }
  0x58   : > { %p5718_p11 = scmp.ne.s32.totalorder %s475_s23, %s5717_s20  ;;  %p5726_p9 = scmp.lt.s32.totalorder %s5717_s20, %s5717_s20 }
  0x5a   : > { %p5720_p13 = pnand %p5718_p11, %p6044_p0  ;;  %p5727_p5 = por %p5726_p9, %p5725_p6 }
  0x5c   : > { %p5721_p1 = pneg %p5720_p13 }
  0x5e   : > { %p5728_p10 = pnand %p5727_p5, %p5721_p1 }
  0x60   : > { %5731 = shalt.err (!%p5728_p10)
}
  0x61   : > { %5342 = dma.hbm_to_vmem [thread:$0]  (!%p6028_p12), %s7275_s10, 3072, %s475_s23, [#allocation6], %s5871_s27, %s5871_s27, %s5872_s21  }
  0x62   : > { %s5873_s13 = smov [#allocation8]   ;;  %s5732_s19 = scalar_lea.hbm %s7279_s14, 3072 }
  0x63   : > { %s496_s15 = sshll.u32 %s5873_s13, 4  ;;  %p5733_p5 = scmp.ne.s32.totalorder %s7279_s14, %s5732_s19  ;;  %s497_s15 = int_to_ptr.vmem [resolvable:$true] %s496_s15 }
  0x64   : > { %p5739_p3 = scmp.lt.u32.totalorder %s5732_s19, %s7279_s14 }
  0x65   : > { %p5735_p10 = pnand %p5733_p5, %p6044_p0 }
  0x67   : > { %p5736_p2 = pneg %p5735_p10 }
  0x69   : > { %p5741_p4 = pnand %p5739_p3, %p5736_p2 }
  0x6b   : > { %5744 = shalt.err (!%p5741_p4)
}
  0x6c   : > { %s5745_s23 = scalar_lea.vmem %s497_s15, 3072  ;;  %p5753_p13 = scmp.lt.s32.totalorder %s497_s15, %s497_s15 }
  0x6d   : > { %p5746_p7 = scmp.ne.s32.totalorder %s497_s15, %s5745_s23  ;;  %p5754_p1 = scmp.lt.s32.totalorder %s5745_s23, %s5745_s23 }
  0x6f   : > { %p5748_p8 = pnand %p5746_p7, %p6044_p0  ;;  %p5755_p6 = por %p5754_p1, %p5753_p13 }
  0x71   : > { %p5749_p11 = pneg %p5748_p8 }
  0x73   : > { %p5756_p9 = pnand %p5755_p6, %p5749_p11 }
  0x75   : > { %5759 = shalt.err (!%p5756_p9)
}
  0x76   : > { %s5874_s27 = smov 128   ;;  %s5875_s21 = smov 8  }
  0x77   : > { %5345 = dma.hbm_to_vmem [thread:$0]  (!%p6028_p12), %s7279_s14, 3072, %s497_s15, [#allocation9], %s5874_s27, %s5874_s27, %s5875_s21  }
  0x78   : > { %p7321_p5 = scmp.ne.s32.totalorder %s7318_s18, 0 }
  0x79   : > { %p7322_p10 = scmp.eq.s32.totalorder (!%p7321_p5), %s5990_s25, 0 }
  0x7a   : > { %528 = sbr.rel (%p7321_p5) target bundleno = 1768 (0x6e8), region = 80 }
  0x81   : > { %5833 = dma.done.wait (%p7322_p10), [#allocation3], 6144   ;;  %p7323_p0 = pmov %p7322_p10 }
  0x83   : > { %5835 = vsyncadd (%p7323_p0), [#allocation3], 4294961152  ;;  %p7324_p2 = pmov %p7323_p0 }
  0x84   : > { %p7325_p3 = pmov %p7323_p0 }
  0x85   : > { %5837 = dma.done.wait (%p7324_p2), [#allocation6], 6144  }
  0x86   : > { %5839 = vsyncadd (%p7325_p3), [#allocation6], 4294961152  ;;  %p7326_p4 = pmov %p7323_p0 }
  0x87   : > { %p7327_p12 = pmov %p7323_p0 }
  0x88   : > { %5841 = dma.done.wait (%p7326_p4), [#allocation9], 3072  }
  0x89   : > { %5843 = vsyncadd (%p7327_p12), [#allocation9], 4294964224  ;;  %p600_p7 = scmp.lt.s32.totalorder %s5990_s25, 1  ;;  %v618_v0 = vlaneseq  ;;  %v5876_v1 = vmov 1966171168   ;;  %s7328_s15 = sld [smem:[#allocation25_spill]] }
  0x8a   : > { %v616_v2 = vunpack.c.l.s4 %v5876_v1  ;;  %vm928_vm0 = vcmask 1041409   ;;  %vm931_vm1 = vcmask 1042434   ;;  %vm934_vm2 = vcmask 1043459   ;;  %v5408_v60 = vld [vmem:[%s7267_s2 + $0xc0] sm:$0xff]   ;;  %s5877_s17 = smov 112   ;;  %s7340_s21 = sld [smem:[#allocation27_spill]] }
  0x8b   : > { %s601_s16 = scalar_select %p600_p7, %s5990_s25, 1  ;;  %v6150_v3 = vshrl.u32 %v618_v0, 7  ;;  %vm937_vm3 = vcmask 1044484   ;;  %vm940_vm4 = vcmask 1045509   ;;  %vm943_vm5 = vcmask 1046534   ;;  %v5409_v61 = vld [vmem:[%s7267_s2 + $0x80] sm:$0xff]   ;;  %4852 = vmatprep.subr.bf16.mxu0 %v5408_v60 }
  0x8c   : > { %v617_v4 = vunpack.c.0.s8 %v616_v2  ;;  %vm946_vm6 = vcmask 1047559   ;;  %v5410_v62 = vld [vmem:[%s7267_s2 + $0x40] sm:$0xff]   ;;  %4853 = vmatpush3.bf16.msra.mxu0 %v5409_v61  ;;  %vm968_vm7 = vcmask 916480   ;;  %vm1233_vm8 = vcmask 1040384   ;;  %s7180_s29 = sand.u32 1, %s5858_s22   ;;  %s7342_s26 = sld [smem:[#allocation23_spill]] }
  0x8d   : > { %s4849_s18 = sshll.u32 %s601_s16, 4  ;;  %4874 = vmatprep.subr.bf16.mxu1 %v5410_v62  ;;  %vm1234_vm9 = vsmask.f32 256  ;;  %vm1291_vm11 = vcmask 1043456   ;;  %vm1292_vm12 = vsmask.f32 3328 }
  0x8e   : > { %s609_s28 = scalar_lea.vmem %s7266_s1, %s4849_s18  ;;  %v6159_v5 = vsub.s32 %v617_v4, %v6150_v3  ;;  %vm6599_vm10 = vmand %vm1233_vm8, %vm1234_vm9  ;;  %vm5879_vm14 = vmmov 0   ;;  %vm4181_vm15 = vcmask 523264   ;;  %s4284_s20 = scalar_lea.sflag [#allocation4], %s7180_s29 }
  0x8f   : > { %s604_s0 = scalar_lea.vmem %s7328_s15, %s4849_s18  ;;  %v6165_v8 = vld [vmem:[%s609_s28] sm:$0xff]  ;;  %v6171_v11 = vld [vmem:[%s609_s28 + $0x8] sm:$0xff]  ;;  %vm6667_vm13 = vmand %vm1291_vm11, %vm1292_vm12  ;;  %s4472_s18 = sshll.u32 %s7180_s29, 4 }
  0x90   : > { %v6161_v6 = vld [vmem:[%s604_s0] sm:$0xff]  ;;  %v6163_v7 = vld [vmem:[%s604_s0 + $0x8] sm:$0xff]  ;;  %s592_s13 = scalar_lea.vmem [#allocation10], %s4472_s18  ;;  %s4851_s15 = sshll.u32 %s5990_s25, 8 }
  0x91   : > { %v621_v9 = vrot.slane %v6161_v6, %v6159_v5  ;;  %v645_v10 = vrot.slane %v6163_v7, %v6159_v5  ;;  %v2193_v12 = vadd.bf16 %v6165_v8, %v6161_v6  ;;  %v2194_v13 = vadd.bf16 %v6171_v11, %v6163_v7  ;;  %s7343_s28 = sld [smem:[#allocation28_spill]]  ;;  %s4303_s24 = sshll.u32 %s592_s13, 4  ;;  %s4304_s24 = int_to_ptr.vmem [resolvable:$true] %s4303_s24 }
  0x92   : > { %s5760_s23 = scalar_lea.vmem %s4304_s24, 256  ;;  %p7344_p11 = scmp.ne.s32.totalorder %s7342_s26, 0 }
  0x93   : > { %v622_v14 = vcombine.high %v621_v9, %v621_v9  ;;  %v629_v15 = vrot.slane %v621_v9, %v6159_v5  ;;  %v646_v16 = vcombine.high %v645_v10, %v645_v10  ;;  %v653_v17 = vrot.slane %v645_v10, %v6159_v5  ;;  %p5761_p8 = scmp.ne.s32.totalorder %s4304_s24, %s5760_s23  ;;  %s5882_s27 = smov [#allocation10]  }
  0x95   : > { %v636_v18 = vrot.slane %v622_v14, %v6159_v5  ;;  %v637_v19 = vcombine.high %v629_v15, %v629_v15  ;;  %v660_v20 = vrot.slane %v646_v16, %v6159_v5  ;;  %v661_v21 = vcombine.high %v653_v17, %v653_v17  ;;  %p5762_p13 = pnand %p5761_p8, %p7344_p11 }
  0x96   : > { %v672_v22 = vshrl.u32 %v629_v15, 16  ;;  %v692_v23 = vshrl.u32 %v653_v17, 16 }
  0x97   : > { %v638_v24 = vcombine.high %v636_v18, %v636_v18  ;;  %v662_v25 = vcombine.high %v660_v20, %v660_v20  ;;  %v677_v26 = vshrl.u32 %v636_v18, 16  ;;  %v682_v27 = vshrl.u32 %v637_v19, 16  ;;  %s7190_s30 = scalar_lea.hbm %s7343_s28, %s4851_s15  ;;  %p5763_p1 = pneg %p5762_p13 }
  0x98   : > { %v697_v28 = vshrl.u32 %v660_v20, 16  ;;  %v702_v29 = vshrl.u32 %v661_v21, 16  ;;  %v6181_v30 = vmax.bf16 %v672_v22, %v629_v15  ;;  %v6183_v31 = vmax.bf16 %v692_v23, %v653_v17 }
  0x99   : > { %v687_v32 = vshrl.u32 %v638_v24, 16  ;;  %v707_v33 = vshrl.u32 %v662_v25, 16  ;;  %v6185_v34 = vmax.bf16 %v677_v26, %v636_v18  ;;  %v6187_v35 = vmax.bf16 %v682_v27, %v637_v19 }
  0x9a   : > { %v6189_v36 = vmax.bf16 %v697_v28, %v660_v20  ;;  %v6191_v37 = vmax.bf16 %v702_v29, %v661_v21  ;;  %v741_v38 = vrot.slane %v6181_v30, %v6159_v5  ;;  %v829_v39 = vrot.slane %v6183_v31, %v6159_v5 }
  0x9b   : > { %v6197_v40 = vmax.bf16 %v687_v32, %v638_v24  ;;  %v6199_v41 = vmax.bf16 %v707_v33, %v662_v25  ;;  %v763_v42 = vrot.slane %v6185_v34, %v6159_v5  ;;  %v785_v43 = vrot.slane %v6187_v35, %v6159_v5 }
  0x9c   : > { %v742_v44 = vcombine.high %v741_v38, %v741_v38  ;;  %v749_v45 = vrot.slane %v741_v38, %v6159_v5  ;;  %v830_v46 = vcombine.high %v829_v39, %v829_v39  ;;  %v837_v47 = vrot.slane %v829_v39, %v6159_v5 }
  0x9d   : > { %v764_v48 = vcombine.high %v763_v42, %v763_v42  ;;  %v771_v49 = vrot.slane %v763_v42, %v6159_v5  ;;  %v786_v50 = vcombine.high %v785_v43, %v785_v43  ;;  %v793_v51 = vrot.slane %v785_v43, %v6159_v5 }
  0x9e   : > { %v807_v52 = vrot.slane %v6197_v40, %v6159_v5  ;;  %v851_v53 = vrot.slane %v6189_v36, %v6159_v5  ;;  %v873_v54 = vrot.slane %v6191_v37, %v6159_v5  ;;  %v895_v55 = vrot.slane %v6199_v41, %v6159_v5 }
  0x9f   : > { %v911_v56 = vunpack.c.l.b16 %v749_v45  ;;  %v913_v57 = vunpack.c.l.b16 %v771_v49  ;;  %v915_v58 = vunpack.c.l.b16 %v793_v51  ;;  %v919_v59 = vunpack.c.l.b16 %v837_v47 }
  0xa0   : > { %v815_v63 = vrot.slane %v807_v52, %v6159_v5  ;;  %v852_v0 = vcombine.high %v851_v53, %v851_v53  ;;  %v859_v1 = vrot.slane %v851_v53, %v6159_v5  ;;  %v874_v2 = vcombine.high %v873_v54, %v873_v54 }
  0xa1   : > { %v881_v4 = vrot.slane %v873_v54, %v6159_v5  ;;  %v896_v9 = vcombine.high %v895_v55, %v895_v55  ;;  %v903_v10 = vrot.slane %v895_v55, %v6159_v5  ;;  %v927_v14 = vrot.slane %v913_v57, 7 }
  0xa2   : > { %v917_v15 = vunpack.c.l.b16 %v815_v63  ;;  %v921_v16 = vunpack.c.l.b16 %v859_v1  ;;  %v930_v17 = vrot.slane %v915_v58, 6  ;;  %v936_v18 = vrot.slane %v919_v59, 4  ;;  %v5412_v63 = vld [vmem:[%s7267_s2 + $0xc8] sm:$0xff]  }
  0xa3   : > { %v923_v19 = vunpack.c.l.b16 %v881_v4  ;;  %v925_v20 = vunpack.c.l.b16 %v903_v10  ;;  %v929_v21 = vsel %vm928_vm0, %v927_v14, %v911_v56  ;;  %v808_v22 = vcombine.high %v807_v52, %v807_v52  ;;  %v5413_v4 = vld [vmem:[%s7267_s2 + $0x88] sm:$0xff]   ;;  %4854 = vmatprep.subr.bf16.mxu0 %v5412_v63 }
  0xa4   : > { %v932_v23 = vsel %vm931_vm1, %v930_v17, %v929_v21  ;;  %v933_v24 = vrot.slane %v917_v15, 5  ;;  %v939_v25 = vrot.slane %v921_v16, 3  ;;  %v756_v26 = vrot.slane %v742_v44, %v6159_v5  ;;  %v5415_v15 = vld [vmem:[%s7267_s2 + $0x8] sm:$0xff]   ;;  %4855 = vmatpush3.bf16.msra.mxu0 %v5413_v4  ;;  %v5418_v21 = vld [vmem:[%s7267_s2 + $0x50] sm:$0xff]  }
  0xa5   : > { %v942_v27 = vrot.slane %v923_v19, 2  ;;  %v945_v28 = vrot.slane %v925_v20, 1  ;;  %v778_v29 = vrot.slane %v764_v48, %v6159_v5  ;;  %v800_v32 = vrot.slane %v786_v50, %v6159_v5  ;;  %v5417_v20 = vld [vmem:[%s7267_s2 + $0x90] sm:$0xff]  }
  0xa6   : > { %v935_v33 = vsel %vm934_vm2, %v933_v24, %v932_v23  ;;  %v822_v38 = vrot.slane %v808_v22, %v6159_v5  ;;  %v844_v39 = vrot.slane %v830_v46, %v6159_v5  ;;  %v866_v42 = vrot.slane %v852_v0, %v6159_v5  ;;  %v5411_v46 = vld [vmem:[%s7267_s2] sm:$0xff]   ;;  %v5419_v23 = vld [vmem:[%s7267_s2 + $0x10] sm:$0xff]  }
  0xa7   : > { %v938_v43 = vsel %vm937_vm3, %v936_v18, %v935_v33  ;;  %v888_v45 = vrot.slane %v874_v2, %v6159_v5  ;;  %v910_v44 = vrot.slane %v896_v9, %v6159_v5  ;;  %v912_v47 = vunpack.c.l.b16 %v756_v26  ;;  %4875 = vmatpush3.bf16.msra.mxu1 %v5411_v46  ;;  %v5414_v9 = vld [vmem:[%s7267_s2 + $0x48] sm:$0xff]   ;;  %v5416_v18 = vld [vmem:[%s7267_s2 + $0xd0] sm:$0xff]   ;;  %v5420_v26 = vld [vmem:[%s7267_s2 + $0xd8] sm:$0xff]  }
  0xa8   : > { %v941_v49 = vsel %vm940_vm4, %v939_v25, %v938_v43  ;;  %v914_v48 = vunpack.c.l.b16 %v778_v29  ;;  %v916_v51 = vunpack.c.l.b16 %v800_v32  ;;  %v918_v50 = vunpack.c.l.b16 %v822_v38  ;;  %4876 = vmatprep.subr.bf16.mxu1 %v5414_v9  ;;  %4856 = vmatprep.subr.bf16.mxu0 %v5416_v18  ;;  %v5423_v29 = vld [vmem:[%s7267_s2 + $0x18] sm:$0xff]   ;;  %v5424_v32 = vld [vmem:[%s7267_s2 + $0xe0] sm:$0xff]   ;;  %v5429_v43 = vld [vmem:[%s7267_s2 + $0xa8] sm:$0xff]  }
  0xa9   : > { %v944_v52 = vsel %vm943_vm5, %v942_v27, %v941_v49  ;;  %v920_v53 = vunpack.c.l.b16 %v844_v39  ;;  %v922_v54 = vunpack.c.l.b16 %v866_v42  ;;  %v924_v55 = vunpack.c.l.b16 %v888_v45  ;;  %4857 = vmatpush3.bf16.msra.mxu0 %v5417_v20  ;;  %v5421_v27 = vld [vmem:[%s7267_s2 + $0x98] sm:$0xff]   ;;  %v5425_v33 = vld [vmem:[%s7267_s2 + $0xa0] sm:$0xff]   ;;  %v5428_v42 = vld [vmem:[%s7267_s2 + $0xe8] sm:$0xff]  }
  0xaa   : > { %v947_v56 = vsel %vm946_vm6, %v945_v28, %v944_v52  ;;  %v926_v57 = vunpack.c.l.b16 %v910_v44  ;;  %v948_v58 = vrot.slane %v914_v48, 7  ;;  %v950_v59 = vrot.slane %v916_v51, 6  ;;  %v5422_v28 = vld [vmem:[%s7267_s2 + $0x58] sm:$0xff]   ;;  %4858 = vmatprep.subr.bf16.mxu0 %v5420_v26  ;;  %v5426_v38 = vld [vmem:[%s7267_s2 + $0x60] sm:$0xff]   ;;  %v5430_v45 = vld [vmem:[%s7267_s2 + $0x68] sm:$0xff]  }
  0xab   : > { %v962_v60 = vpack.c.b16 %v947_v56, %v947_v56  ;;  %v952_v61 = vrot.slane %v918_v50, 5  ;;  %v954_v62 = vrot.slane %v920_v53, 4  ;;  %v956_v1 = vrot.slane %v922_v54, 3  ;;  %4877 = vmatpush3.bf16.msra.mxu1 %v5415_v15  ;;  %v5427_v39 = vld [vmem:[%s7267_s2 + $0x20] sm:$0xff]   ;;  %v5431_v44 = vld [vmem:[%s7267_s2 + $0x28] sm:$0xff]   ;;  %v5434_v49 = vld [vmem:[%s7267_s2 + $0x70] sm:$0xff]  }
  0xac   : > { %v949_v0 = vsel %vm928_vm0, %v948_v58, %v912_v47  ;;  %v958_v2 = vrot.slane %v924_v55, 2  ;;  %v960_v14 = vrot.slane %v926_v57, 1  ;;  %4878 = vmatprep.subr.bf16.mxu1 %v5418_v21  ;;  %v5432_v47 = vld [vmem:[%s7267_s2 + $0xf0] sm:$0xff]   ;;  %v5436_v50 = vld [vmem:[%s7267_s2 + $0xf8] sm:$0xff]   ;;  %v5440_v55 = vld [vmem:[%s7267_s2 + $0x140] sm:$0xff]   ;;  %v2203_v46 = vrot.slane %v2193_v12, %v6159_v5 }
  0xad   : > { %964 = vrot.lane.b32.xlu0 %v962_v60, %s5877_s17  ;;  %v951_v10 = vsel %vm931_vm1, %v950_v59, %v949_v0  ;;  %4859 = vmatpush3.bf16.msra.mxu0 %v5421_v27  ;;  %v5433_v48 = vld [vmem:[%s7267_s2 + $0xb0] sm:$0xff]   ;;  %v5438_v52 = vld [vmem:[%s7267_s2 + $0x78] sm:$0xff]   ;;  %v2227_v59 = vrot.slane %v2194_v13, %v6159_v5 }
  0xae   : > { %v953_v16 = vsel %vm934_vm2, %v952_v61, %v951_v10  ;;  %4860 = vmatprep.subr.bf16.mxu0 %v5424_v32  ;;  %v5435_v51 = vld [vmem:[%s7267_s2 + $0x30] sm:$0xff]   ;;  %v5437_v53 = vld [vmem:[%s7267_s2 + $0xb8] sm:$0xff]   ;;  %v2204_v56 = vcombine.high %v2203_v46, %v2203_v46  ;;  %v2211_v57 = vrot.slane %v2203_v46, %v6159_v5 }
  0xaf   : > { %v955_v17 = vsel %vm937_vm3, %v954_v62, %v953_v16  ;;  %4879 = vmatpush3.bf16.msra.mxu1 %v5419_v23  ;;  %v5439_v54 = vld [vmem:[%s7267_s2 + $0x38] sm:$0xff]   ;;  %v2228_v62 = vcombine.high %v2227_v59, %v2227_v59  ;;  %v2235_v0 = vrot.slane %v2227_v59, %v6159_v5 }
  0xb0   : > { %v957_v19 = vsel %vm940_vm4, %v956_v1, %v955_v17  ;;  %4880 = vmatprep.subr.bf16.mxu1 %v5422_v28  ;;  %v2218_v58 = vrot.slane %v2204_v56, %v6159_v5  ;;  %v2219_v60 = vcombine.high %v2211_v57, %v2211_v57  ;;  %v2251_v12 = vrot.slane %v2211_v57, %v6159_v5 }
  0xb1   : > { %v959_v22 = vsel %vm943_vm5, %v958_v2, %v957_v19  ;;  %4861 = vmatpush3.bf16.msra.mxu0 %v5425_v33  ;;  %v2242_v8 = vrot.slane %v2228_v62, %v6159_v5  ;;  %v2243_v4 = vcombine.high %v2235_v0, %v2235_v0  ;;  %v2339_v7 = vrot.slane %v2235_v0, %v6159_v5 }
  0xb2   : > { %v961_v24 = vsel %vm946_vm6, %v960_v14, %v959_v22  ;;  %4862 = vmatprep.subr.bf16.mxu0 %v5428_v42  ;;  %v2220_v61 = vcombine.high %v2218_v58, %v2218_v58  ;;  %v2273_v63 = vrot.slane %v2218_v58, %v6159_v5  ;;  %v2295_v6 = vrot.slane %v2219_v60, %v6159_v5 }
  0xb3   : > { %v963_v25 = vpack.c.b16 %v961_v24, %v961_v24  ;;  %4881 = vmatpush3.bf16.msra.mxu1 %v5423_v29  ;;  %v2244_v11 = vcombine.high %v2242_v8, %v2242_v8  ;;  %v2252_v13 = vcombine.high %v2251_v12, %v2251_v12  ;;  %v2340_v16 = vcombine.high %v2339_v7, %v2339_v7 }
  0xb4   : > { %4882 = vmatprep.subr.bf16.mxu1 %v5426_v38  ;;  %v2274_v1 = vcombine.high %v2273_v63, %v2273_v63  ;;  %v2317_v2 = vrot.slane %v2220_v61, %v6159_v5  ;;  %v2296_v9 = vcombine.high %v2295_v6, %v2295_v6  ;;  %v2361_v17 = vrot.slane %v2242_v8, %v6159_v5 }
  0xb5   : > { %966 = vrot.lane.b32.xlu0 %v963_v25, %s5877_s17  ;;  %4863 = vmatpush3.bf16.msra.mxu0 %v5429_v43  ;;  %v2383_v18 = vrot.slane %v2243_v4, %v6159_v5  ;;  %v2266_v19 = vrot.slane %v2252_v13, %v6159_v5  ;;  %v2514_v22 = vrot.slane %v2244_v11, %v6159_v5  ;;  %s7341_s17 = smov %s7340_s21 }
  0xb6   : > { %4864 = vmatprep.subr.bf16.mxu0 %v5432_v47  ;;  %v6360_v10 = vrot.slane %v2274_v1, %v6159_v5  ;;  %v2318_v14 = vcombine.high %v2317_v2, %v2317_v2  ;;  %v6363_v15 = vrot.slane %v2296_v9, %v6159_v5  ;;  %v6374_v23 = vrot.slane %v2340_v16, %v6159_v5 }
  0xb7   : > { %4883 = vmatpush3.bf16.msra.mxu1 %v5427_v39  ;;  %v2362_v24 = vcombine.high %v2361_v17, %v2361_v17  ;;  %v2384_v25 = vcombine.high %v2383_v18, %v2383_v18  ;;  %v6377_v27 = vunpack.c.l.b16 %v2266_v19  ;;  %v2515_v32 = vcombine.high %v2514_v22, %v2514_v22 }
  0xb8   : > { %4884 = vmatprep.subr.bf16.mxu1 %v5430_v45  ;;  %v6369_v20 = vrot.slane %v2318_v14, %v6159_v5  ;;  %v2402_v21 = vunpack.c.l.b16 %v6360_v10  ;;  %v7303_v26 = vunpack.c.l.b16 %v6363_v15  ;;  %v7300_v39 = vunpack.c.l.b16 %v6374_v23 }
  0xb9   : > { %4865 = vmatpush3.bf16.msra.mxu0 %v5433_v48  ;;  %v6385_v33 = vrot.slane %v2362_v24, %v6159_v5  ;;  %v6388_v38 = vrot.slane %v2384_v25, %v6159_v5  ;;  %v6400_v45 = vrot.slane %v2515_v32, %v6159_v5  ;;  %v2259_v47 = vrot.slane %v2251_v12, %v6159_v5 }
  0xba   : > { %4866 = vmatprep.subr.bf16.mxu0 %v5436_v50  ;;  %v7301_v28 = vunpack.c.l.b16 %v6369_v20  ;;  %v6382_v29 = vrot.slane %v2402_v21, 7  ;;  %v6393_v42 = vrot.slane %v7303_v26, 6  ;;  %v2325_v58 = vrot.slane %v2317_v2, %v6159_v5 }
  0xbb   : > { %4885 = vmatpush3.bf16.msra.mxu1 %v5431_v44  ;;  %v7298_v48 = vunpack.c.l.b16 %v6388_v38  ;;  %v2347_v60 = vrot.slane %v2339_v7, %v6159_v5  ;;  %v2369_v61 = vrot.slane %v2361_v17, %v6159_v5  ;;  %v2391_v62 = vrot.slane %v2383_v18, %v6159_v5 }
  0xbc   : > { %4886 = vmatprep.subr.bf16.mxu1 %v5434_v49  ;;  %v6397_v43 = vrot.slane %v7301_v28, 5  ;;  %v2540_v44 = vsel %vm928_vm0, %v6382_v29, %v6377_v27  ;;  %v7299_v49 = vunpack.c.l.b16 %v6385_v33  ;;  %v6437_v0 = vunpack.c.l.b16 %v2259_v47 }
  0xbd   : > { %4867 = vmatpush3.bf16.msra.mxu0 %v5437_v53  ;;  %v2541_v50 = vsel %vm931_vm1, %v6393_v42, %v2540_v44  ;;  %v6425_v56 = vrot.slane %v7298_v48, 2  ;;  %v6445_v1 = vunpack.c.l.b16 %v2325_v58  ;;  %v6447_v2 = vunpack.c.l.b16 %v2347_v60 }
  0xbe   : > { %4896 = vmatprep.subr.bf16.mxu0 %v5440_v55  ;;  %v2542_v53 = vsel %vm934_vm2, %v6397_v43, %v2541_v50  ;;  %v2303_v55 = vrot.slane %v2295_v6, %v6159_v5  ;;  %v6421_v46 = vrot.slane %v7299_v49, 3  ;;  %v6449_v4 = vunpack.c.l.b16 %v2369_v61 }
  0xbf   : > { %4887 = vmatpush3.bf16.msra.mxu1 %v5435_v51  ;;  %v6410_v51 = vrot.slane %v7300_v39, 4  ;;  %v6454_v7 = vunpack.c.l.b16 %v2391_v62  ;;  %v2417_v14 = vrot.slane %v6445_v1, 5  ;;  %v2419_v16 = vrot.slane %v6447_v2, 4 }
  0xc0   : > { %4888 = vmatprep.subr.bf16.mxu1 %v5438_v52  ;;  %v7297_v52 = vunpack.c.l.b16 %v6400_v45  ;;  %v6441_v8 = vunpack.c.l.b16 %v2303_v55  ;;  %v2421_v17 = vrot.slane %v6449_v4, 3  ;;  %v2522_v18 = vrot.slane %v2514_v22, %v6159_v5 }
  0xc1   : > { %v2543_v57 = vsel %vm937_vm3, %v6410_v51, %v2542_v53  ;;  %v7302_v24 = vrot.slane %v6454_v7, 2 }
  0xc2   : > { %v2546_v59 = vrot.slane %v7297_v52, 1  ;;  %v2415_v13 = vrot.slane %v6441_v8, 6  ;;  %v6468_v32 = vunpack.c.l.b16 %v2522_v18 }
  0xc3   : > { %4889 = vmatpush3.bf16.msra.mxu1 %v5439_v54  ;;  %v2281_v54 = vrot.slane %v2273_v63, %v6159_v5  ;;  %v2544_v63 = vsel %vm940_vm4, %v6421_v46, %v2543_v57 }
  0xc4   : > { %v2545_v12 = vsel %vm943_vm5, %v6425_v56, %v2544_v63  ;;  %v2538_v53 = vrot.slane %v6468_v32, 1 }
  0xc5   : > { %v6439_v6 = vunpack.c.l.b16 %v2281_v54  ;;  %v6452_v9 = vsel %vm946_vm6, %v2546_v59, %v2545_v12 }
  0xc7   : > { %v2413_v11 = vrot.slane %v6439_v6, 7 }
  0xc9   : > { %v2532_v19 = vsel %vm928_vm0, %v2413_v11, %v6437_v0 }
  0xca   : > { %v2533_v25 = vsel %vm931_vm1, %v2415_v13, %v2532_v19 }
  0xcb   : > { %v2534_v44 = vsel %vm934_vm2, %v2417_v14, %v2533_v25 }
  0xcc   : > { %v2535_v47 = vsel %vm937_vm3, %v2419_v16, %v2534_v44 }
  0xcd   : > { %v2536_v50 = vsel %vm940_vm4, %v2421_v17, %v2535_v47 }
  0xce   : > { %v2537_v54 = vsel %vm943_vm5, %v7302_v24, %v2536_v50 }
  0xcf   : > { %v6484_v55 = vsel %vm946_vm6, %v2538_v53, %v2537_v54 }
 0x11f   : > { %v965_v22 = vpop.permute.xlu0 %964 }
 0x127   : > { %v967_v57 = vpop.permute.xlu0 %966 }
 0x128   : > { %v969_v58 = vsel %vm968_vm7, %v965_v22, %v967_v57  ;;  %v973_v59 = vsel %vm968_vm7, %v967_v57, %v965_v22 }
 0x129   : > { %v975_v60 = vcombine.low %v969_v58, %v973_v59  ;;  %v6497_v58 = vsel %vm931_vm1, %v6382_v29, %v6377_v27 }
 0x12b   : > { %v982_v61 = vrot.slane %v975_v60, %v6159_v5 }
 0x12d   : > { %v983_v62 = vcombine.high %v982_v61, %v982_v61  ;;  %v990_v63 = vrot.slane %v982_v61, %v6159_v5 }
 0x12f   : > { %v997_v12 = vrot.slane %v983_v62, %v6159_v5  ;;  %v998_v18 = vcombine.high %v990_v63, %v990_v63  ;;  %v1001_v19 = vshrl.u32 %v990_v63, 16  ;;  %v1020_v25 = vmax.bf16 %v990_v63, %v6181_v30 }
 0x131   : > { %v999_v44 = vcombine.high %v997_v12, %v997_v12  ;;  %v1004_v47 = vshrl.u32 %v997_v12, 16  ;;  %v1007_v50 = vshrl.u32 %v998_v18, 16  ;;  %v1021_v53 = vmax.bf16 %v1001_v19, %v6185_v34 }
 0x132   : > { %v1022_v54 = vmax.bf16 %v997_v12, %v6187_v35  ;;  %v1024_v22 = vmax.bf16 %v998_v18, %v6183_v31  ;;  %v1041_v57 = vrot.slane %v1020_v25, %v6159_v5 }
 0x133   : > { %v1023_v59 = vmax.bf16 %v1004_v47, %v6197_v40  ;;  %v1025_v30 = vmax.bf16 %v1007_v50, %v6189_v36  ;;  %v1026_v60 = vmax.bf16 %v999_v44, %v6191_v37  ;;  %v1063_v61 = vrot.slane %v1021_v53, %v6159_v5 }
 0x134   : > { %v1042_v34 = vcombine.high %v1041_v57, %v1041_v57  ;;  %v1049_v35 = vrot.slane %v1041_v57, %v6159_v5  ;;  %v1085_v31 = vrot.slane %v1022_v54, %v6159_v5  ;;  %v1129_v62 = vrot.slane %v1024_v22, %v6159_v5 }
 0x135   : > { %v1064_v63 = vcombine.high %v1063_v61, %v1063_v61  ;;  %v1071_v12 = vrot.slane %v1063_v61, %v6159_v5  ;;  %v1107_v29 = vrot.slane %v1023_v59, %v6159_v5  ;;  %v6509_v40 = vrot.slane %v1025_v30, %v6159_v5 }
 0x136   : > { %v1056_v36 = vrot.slane %v1042_v34, %v6159_v5  ;;  %v1086_v37 = vcombine.high %v1085_v31, %v1085_v31  ;;  %v1093_v18 = vrot.slane %v1085_v31, %v6159_v5  ;;  %v1130_v19 = vcombine.high %v1129_v62, %v1129_v62 }
 0x137   : > { %v1078_v25 = vrot.slane %v1064_v63, %v6159_v5  ;;  %v1108_v47 = vcombine.high %v1107_v29, %v1107_v29  ;;  %v1115_v50 = vrot.slane %v1107_v29, %v6159_v5  ;;  %v1137_v53 = vrot.slane %v1129_v62, %v6159_v5 }
 0x138   : > { %v1100_v54 = vrot.slane %v1086_v37, %v6159_v5  ;;  %v6517_v22 = vunpack.c.l.b16 %v1049_v35  ;;  %v1190_v57 = vunpack.c.l.b16 %v1056_v36  ;;  %v6521_v59 = vsel %vm931_vm1, %v2413_v11, %v6437_v0 }
 0x139   : > { %v6523_v30 = vunpack.c.l.b16 %v1071_v12  ;;  %v6525_v61 = vunpack.c.l.b16 %v1078_v25  ;;  %v6527_v34 = vunpack.c.l.b16 %v1093_v18  ;;  %v6529_v31 = vunpack.c.l.b16 %v1115_v50 }
 0x13a   : > { %v6531_v63 = vunpack.c.l.b16 %v1100_v54  ;;  %v6533_v62 = vunpack.c.l.b16 %v1137_v53  ;;  %v1010_v29 = vshrl.u32 %v999_v44, 16  ;;  %v1122_v35 = vrot.slane %v1108_v47, %v6159_v5 }
 0x13b   : > { %v1144_v36 = vrot.slane %v1130_v19, %v6159_v5  ;;  %v1152_v11 = vcombine.high %v6509_v40, %v6509_v40  ;;  %v1173_v12 = vrot.slane %v1026_v60, %v6159_v5  ;;  %v1375_v37 = vrot.slane %v6525_v61, 7 }
 0x13c   : > { %v1027_v18 = vmax.bf16 %v1010_v29, %v6199_v41  ;;  %v6542_v25 = vunpack.c.l.b16 %v1122_v35  ;;  %v1377_v50 = vrot.slane %v6531_v63, 6  ;;  %v1216_v53 = vrot.slane %v1190_v57, 7 }
 0x13d   : > { %v1166_v44 = vrot.slane %v1152_v11, %v6159_v5  ;;  %v1174_v54 = vcombine.high %v1173_v12, %v1173_v12  ;;  %v6546_v47 = vunpack.c.l.b16 %v1144_v36  ;;  %v1376_v19 = vsel %vm928_vm0, %v1375_v37, %v1190_v57 }
 0x13e   : > { %v1245_v60 = vrot.slane %v1027_v18, %v6159_v5  ;;  %v1378_v52 = vsel %vm931_vm1, %v1377_v50, %v1376_v19  ;;  %v1379_v41 = vrot.slane %v6542_v25, 5  ;;  %v1217_v29 = vrot.slane %v6525_v61, 6 }
 0x13f   : > { %v1188_v35 = vrot.slane %v1174_v54, %v6159_v5  ;;  %v6554_v48 = vunpack.c.l.b16 %v1166_v44  ;;  %v1381_v11 = vrot.slane %v6546_v47, 4  ;;  %v1219_v36 = vrot.slane %v6531_v63, 5 }
 0x140   : > { %v1246_v49 = vcombine.high %v1245_v60, %v1245_v60  ;;  %v1380_v57 = vsel %vm934_vm2, %v1379_v41, %v1378_v52  ;;  %v1218_v37 = vsel %vm931_vm1, %v1217_v29, %v1216_v53  ;;  %v1221_v18 = vrot.slane %v6542_v25, 4 }
 0x141   : > { %v6561_v50 = vunpack.c.l.b16 %v1188_v35  ;;  %v1382_v19 = vsel %vm937_vm3, %v1381_v11, %v1380_v57  ;;  %v1383_v39 = vrot.slane %v6554_v48, 3  ;;  %v1220_v44 = vsel %vm934_vm2, %v1219_v36, %v1218_v37 }
 0x142   : > { %v6567_v54 = vrot.slane %v1246_v49, %v6159_v5  ;;  %v1222_v28 = vsel %vm937_vm3, %v1221_v18, %v1220_v44  ;;  %v1223_v24 = vrot.slane %v6546_v47, 3  ;;  %v1225_v52 = vrot.slane %v6554_v48, 2 }
 0x143   : > { %v1384_v53 = vsel %vm940_vm4, %v1383_v39, %v1382_v19  ;;  %v1385_v41 = vrot.slane %v6561_v50, 2  ;;  %v1227_v29 = vrot.slane %v6561_v50, 1  ;;  %v1159_v35 = vrot.slane %v6509_v40, %v6159_v5 }
 0x144   : > { %v1262_v11 = vunpack.c.l.b16 %v6567_v54  ;;  %v1224_v49 = vsel %vm940_vm4, %v1223_v24, %v1222_v28  ;;  %v1181_v36 = vrot.slane %v1173_v12, %v6159_v5  ;;  %v1253_v57 = vrot.slane %v1245_v60, %v6159_v5 }
 0x145   : > { %v1386_v37 = vsel %vm943_vm5, %v1385_v41, %v1384_v53  ;;  %v1226_v18 = vsel %vm943_vm5, %v1225_v52, %v1224_v49  ;;  %v6583_v39 = vunpack.c.l.b16 %v1159_v35  ;;  %v1361_v19 = vrot.slane %v6523_v30, 7  ;;  %v5635_v53 = vld [vmem:[%s7277_s12 + $0x134] ss:$8 sps:$4 sm:$0xff]  }
 0x146   : > { %v1387_v44 = vrot.slane %v1262_v11, 1  ;;  %v1228_v26 = vsel %vm946_vm6, %v1227_v29, %v1226_v18  ;;  %v6587_v40 = vunpack.c.l.b16 %v1181_v36  ;;  %v6589_v54 = vunpack.c.l.b16 %v1253_v57 }
 0x147   : > { %v1230_v28 = vpack.c.b16 %v1228_v26, %v1228_v26  ;;  %v1362_v24 = vsel %vm928_vm0, %v1361_v19, %v6517_v22  ;;  %v1363_v5 = vrot.slane %v6527_v34, 6  ;;  %v1365_v12 = vrot.slane %v6529_v31, 5 }
 0x148   : > { %v1203_v60 = vrot.slane %v6517_v22, 7  ;;  %v1388_v52 = vsel %vm946_vm6, %v1387_v44, %v1386_v37  ;;  %v1367_v41 = vrot.slane %v6533_v62, 4  ;;  %v2428_v26 = vsel %vm934_vm2, %v6393_v42, %v6497_v58 }
 0x149   : > { %v1390_v29 = vpack.c.b16 %v1388_v52, %v1388_v52  ;;  %v1237_v35 = vsel %vm6599_vm10, 0, %v1230_v28  ;;  %v1364_v22 = vsel %vm931_vm1, %v1363_v5, %v1362_v24  ;;  %v1369_v49 = vrot.slane %v6583_v39, 3 }
 0x14a   : > { %1657 = vmatprep.mubr.bf16.mxu1 %v1237_v35  ;;  %v1366_v36 = vsel %vm934_vm2, %v1365_v12, %v1364_v22  ;;  %v1204_v57 = vrot.slane %v6523_v30, 6  ;;  %v1206_v37 = vrot.slane %v6527_v34, 5  ;;  %v1208_v18 = vrot.slane %v6529_v31, 4 }
 0x14b   : > { %1521 = vmatprep.mubr.bf16.mxu0 %v1390_v29  ;;  %v1368_v42 = vsel %vm937_vm3, %v1367_v41, %v1366_v36  ;;  %v1371_v58 = vrot.slane %v6587_v40, 2  ;;  %v1373_v19 = vrot.slane %v6589_v54, 1  ;;  %v1210_v44 = vrot.slane %v6533_v62, 3 }
 0x14c   : > { %v1370_v28 = vsel %vm940_vm4, %v1369_v49, %v1368_v42  ;;  %v1205_v24 = vsel %vm931_vm1, %v1204_v57, %v1203_v60  ;;  %v1275_v5 = vrot.slane %v6531_v63, 7  ;;  %v1277_v12 = vrot.slane %v6542_v25, 6  ;;  %v5441_v60 = vld [vmem:[%s7267_s2 + $0x100] sm:$0xff]  }
 0x14d   : > { %v1372_v52 = vsel %vm943_vm5, %v1371_v58, %v1370_v28  ;;  %v1207_v29 = vsel %vm934_vm2, %v1206_v37, %v1205_v24  ;;  %v1212_v41 = vrot.slane %v6583_v39, 2  ;;  %v1214_v35 = vrot.slane %v6587_v40, 1 }
 0x14e   : > { %v1374_v22 = vsel %vm946_vm6, %v1373_v19, %v1372_v52  ;;  %v1209_v36 = vsel %vm937_vm3, %v1208_v18, %v1207_v29  ;;  %v1276_v63 = vsel %vm928_vm0, %v1275_v5, %v6525_v61  ;;  %v1279_v25 = vrot.slane %v6546_v47, 5  ;;  %v5442_v18 = vld [vmem:[%s7267_s2 + $0x148] sm:$0xff]  }
 0x14f   : > { %v1389_v49 = vpack.c.b16 %v1374_v22, %v1374_v22  ;;  %v1211_v57 = vsel %vm940_vm4, %v1210_v44, %v1209_v36  ;;  %v1278_v37 = vsel %vm931_vm1, %v1277_v12, %v1276_v63  ;;  %v1281_v42 = vrot.slane %v6554_v48, 4  ;;  %v5443_v12 = vld [vmem:[%s7267_s2 + $0x108] sm:$0xff]  }
 0x150   : > { %v1213_v58 = vsel %vm943_vm5, %v1212_v41, %v1211_v57  ;;  %v1280_v19 = vsel %vm934_vm2, %v1279_v25, %v1278_v37  ;;  %v1283_v28 = vrot.slane %v6561_v50, 3  ;;  %v2430_v61 = vsel %vm937_vm3, %v6397_v43, %v2428_v26 }
 0x151   : > { %1522 = vmatmul.mubr.bf16.vlgmr.msra.gmra.mrb[0].mxu0 %v1389_v49  ;;  %v1215_v47 = vsel %vm946_vm6, %v1214_v35, %v1213_v58  ;;  %v1282_v44 = vsel %vm937_vm3, %v1281_v42, %v1280_v19  ;;  %v1285_v24 = vrot.slane %v1262_v11, 2  ;;  %v2416_v43 = vsel %vm934_vm2, %v2415_v13, %v6521_v59  ;;  %v5444_v11 = vld [vmem:[%s7267_s2 + $0x150] sm:$0xff]  }
 0x152   : > { %v1229_v48 = vpack.c.b16 %v1215_v47, %v1215_v47  ;;  %4897 = vmatpush3.bf16.msra.mxu0 %v5441_v60  ;;  %v1284_v5 = vsel %vm940_vm4, %v1283_v28, %v1282_v44  ;;  %v2432_v26 = vsel %vm940_vm4, %v6410_v51, %v2430_v61  ;;  %v2418_v51 = vsel %vm937_vm3, %v2417_v14, %v2416_v43 }
 0x153   : > { %v1286_v50 = vsel %vm943_vm5, %v1285_v24, %v1284_v5  ;;  %4898 = vmatprep.subr.bf16.mxu0 %v5442_v18  ;;  %v2434_v41 = vsel %vm943_vm5, %v6421_v46, %v2432_v26  ;;  %v2871_v35 = vrot.slane %v6377_v27, 1  ;;  %v5445_v46 = vld [vmem:[%s7267_s2 + $0x110] sm:$0xff]   ;;  %v1263_v36 = vrot.slane %v6527_v34, 7  ;;  %v5446_v27 = vld [vmem:[%s7267_s2 + $0x158] sm:$0xff]  }
 0x154   : > { %v1236_v52 = vsel %vm6599_vm10, 0, %v1229_v48  ;;  %v1288_v29 = vpack.c.b16 %v1286_v50, %v1286_v50  ;;  %v6673_v59 = vsel %vm946_vm6, %v6425_v56, %v2434_v41  ;;  %v2420_v56 = vsel %vm940_vm4, %v2419_v16, %v2418_v51 }
 0x155   : > { %1658 = vmatmul.mubr.bf16.vlgmr.msra.gmra.mrb[0].mxu1 %v1236_v52  ;;  %v2422_v14 = vsel %vm943_vm5, %v2421_v17, %v2420_v56  ;;  %v2872_v60 = vsel %vm928_vm0, %v2402_v21, %v2871_v35  ;;  %v7333_v34 = vunpack.c.l.b16 %v6363_v15  ;;  %v7334_v25 = vrot.slane %v6454_v7, 2  ;;  %v5447_v15 = vld [vmem:[%s7267_s2 + $0x118] sm:$0xff]   ;;  %v5453_v35 = vld [vmem:[%s7267_s2 + $0x130] sm:$0xff]  }
 0x156   : > { %v1295_v22 = vsel %vm6667_vm13, %v1288_v29, 0  ;;  %4899 = vmatpush3.bf16.msra.mxu0 %v5443_v12  ;;  %v7335_v49 = vunpack.c.l.b16 %v6369_v20  ;;  %v1265_v37 = vrot.slane %v6529_v31, 6  ;;  %v7336_v17 = vunpack.c.l.b16 %v6374_v23 }
 0x157   : > { %1826 = vmatprep.mubr.bf16.mxu0 %v1295_v22  ;;  %4900 = vmatprep.subr.bf16.mxu0 %v5444_v11  ;;  %v2873_v63 = vrot.slane %v7333_v34, 7  ;;  %v6702_v16 = vsel %vm946_vm6, %v7334_v25, %v2422_v14  ;;  %v7337_v21 = vunpack.c.l.b16 %v6385_v33  ;;  %v1264_v58 = vsel %vm928_vm0, %v1263_v36, %v6523_v30  ;;  %v5448_v33 = vld [vmem:[%s7267_s2 + $0x160] sm:$0xff]   ;;  %v5459_v25 = vld [vmem:[#allocation2 + $0x88] sm:$0xff]  }
 0x158   : > { %v2875_v57 = vrot.slane %v7335_v49, 6  ;;  %v2877_v10 = vrot.slane %v7336_v17, 5  ;;  %v7338_v31 = vunpack.c.l.b16 %v6388_v38  ;;  %v7339_v28 = vunpack.c.l.b16 %v6400_v45  ;;  %v5460_v49 = vld [vmem:[#allocation2 + $0xd0] sm:$0xff]   ;;  %v5464_v17 = vld [vmem:[#allocation2 + $0xe0] sm:$0xff]  }
 0x159   : > { %v2874_v42 = vsel %vm931_vm1, %v2873_v63, %v2872_v60  ;;  %v2879_v18 = vrot.slane %v7337_v21, 4  ;;  %v2857_v47 = vrot.slane %v6437_v0, 1  ;;  %v2859_v44 = vrot.slane %v6441_v8, 7  ;;  %v5449_v0 = vld [vmem:[%s7267_s2 + $0x120] sm:$0xff]   ;;  %v5458_v63 = vld [vmem:[#allocation2 + $0xc8] sm:$0xff]  }
 0x15a   : > { %4901 = vmatpush3.bf16.msra.mxu0 %v5445_v46  ;;  %v2876_v20 = vsel %vm934_vm2, %v2875_v57, %v2874_v42  ;;  %v2881_v19 = vrot.slane %v7338_v31, 3  ;;  %v2883_v23 = vrot.slane %v7339_v28, 2  ;;  %v2861_v24 = vrot.slane %v6445_v1, 6  ;;  %v5454_v46 = vld [vmem:[%s7267_s2 + $0x178] sm:$0xff]   ;;  %v5457_v60 = vld [vmem:[#allocation2 + $0x80] sm:$0xff]   ;;  %v5461_v57 = vld [vmem:[#allocation2 + $0x90] sm:$0xff]  }
 0x15b   : > { %4902 = vmatprep.subr.bf16.mxu0 %v5446_v27  ;;  %v2878_v61 = vsel %vm937_vm3, %v2877_v10, %v2876_v20  ;;  %v2863_v38 = vrot.slane %v6447_v2, 5  ;;  %v1266_v45 = vsel %vm931_vm1, %v1265_v37, %v1264_v58  ;;  %v2858_v5 = vsel %vm928_vm0, %v6439_v6, %v2857_v47  ;;  %v5450_v6 = vld [vmem:[%s7267_s2 + $0x168] sm:$0xff]   ;;  %v5456_v27 = vld [vmem:[#allocation2 + $0xc0] sm:$0xff]   ;;  %v5462_v37 = vld [vmem:[#allocation2 + $0xd8] sm:$0xff]  }
 0x15c   : > { %v2880_v30 = vsel %vm940_vm4, %v2879_v18, %v2878_v61  ;;  %v2865_v12 = vrot.slane %v6449_v4, 4  ;;  %v1267_v8 = vrot.slane %v6533_v62, 5  ;;  %v2860_v2 = vsel %vm931_vm1, %v2859_v44, %v2858_v5  ;;  %v5463_v42 = vld [vmem:[#allocation2 + $0x98] sm:$0xff]   ;;  %v5466_v10 = vld [vmem:[#allocation2 + $0xe8] sm:$0xff]   ;;  %v5468_v18 = vld [vmem:[#allocation2 + $0xf0] sm:$0xff]  }
 0x15d   : > { %v2882_v48 = vsel %vm943_vm5, %v2881_v19, %v2880_v30  ;;  %v2867_v43 = vrot.slane %v6454_v7, 3  ;;  %v2862_v4 = vsel %vm934_vm2, %v2861_v24, %v2860_v2  ;;  %v2869_v50 = vrot.slane %v6468_v32, 2  ;;  %v5451_v7 = vld [vmem:[%s7267_s2 + $0x128] sm:$0xff]   ;;  %v5452_v32 = vld [vmem:[%s7267_s2 + $0x170] sm:$0xff]   ;;  %v5470_v58 = vld [vmem:[#allocation2 + $0xf8] sm:$0xff]  }
 0x15e   : > { %4903 = vmatpush3.bf16.msra.mxu0 %v5447_v15  ;;  %v6741_v1 = vsel %vm946_vm6, %v2883_v23, %v2882_v48  ;;  %v1268_v11 = vsel %vm934_vm2, %v1267_v8, %v1266_v45  ;;  %v2864_v62 = vsel %vm937_vm3, %v2863_v38, %v2862_v4  ;;  %v1269_v26 = vrot.slane %v6583_v39, 4  ;;  %v5467_v21 = vld [vmem:[#allocation2 + $0xa8] sm:$0xff]   ;;  %v5469_v15 = vld [vmem:[#allocation2 + $0xb0] sm:$0xff]   ;;  %v5471_v20 = vld [vmem:[#allocation2 + $0xb8] sm:$0xff]  }
 0x15f   : > { %4904 = vmatprep.subr.bf16.mxu0 %v5448_v33  ;;  %v2866_v52 = vsel %vm940_vm4, %v2865_v12, %v2864_v62  ;;  %v1271_v39 = vrot.slane %v6587_v40, 3  ;;  %v1273_v36 = vrot.slane %v6589_v54, 2  ;;  %v5455_v40 = vld [vmem:[%s7267_s2 + $0x138] sm:$0xff]   ;;  %v2549_v34 = vpack.c.b16 %v6452_v9, %v6452_v9  ;;  %v5465_v9 = vld [vmem:[#allocation2 + $0xa0] sm:$0xff]   ;;  %v5474_v33 = vld [vmem:[#allocation2 + $0x48] sm:$0xff]  }
 0x160   : > { %v2868_v29 = vsel %vm943_vm5, %v2867_v43, %v2866_v52  ;;  %v1270_v41 = vsel %vm937_vm3, %v1269_v26, %v1268_v11  ;;  %v5472_v31 = vld [vmem:[#allocation2 + $0x40] sm:$0xff]   ;;  %v2438_v19 = vpack.c.b16 %v6673_v59, %v6673_v59  ;;  %v2548_v28 = vpack.c.b16 %v6484_v55, %v6484_v55  ;;  %v5475_v47 = vld [vmem:[#allocation2 + $0x8] sm:$0xff]   ;;  %v5476_v44 = vld [vmem:[#allocation2 + $0x50] sm:$0xff]  }
 0x161   : > { %v6763_v51 = vsel %vm946_vm6, %v2869_v50, %v2868_v29  ;;  %v1272_v22 = vsel %vm940_vm4, %v1271_v39, %v1270_v41  ;;  %v5473_v23 = vld [vmem:[#allocation2] sm:$0xff]   ;;  %v5477_v30 = vld [vmem:[#allocation2 + $0x10] sm:$0xff]   ;;  %v5478_v59 = vld [vmem:[#allocation2 + $0x58] sm:$0xff]   ;;  %v2437_v2 = vpack.c.b16 %v6702_v16, %v6702_v16  ;;  %v5878_v4 = vmov 0.0  }
 0x162   : > { %4905 = vmatpush3.bf16.msra.mxu0 %v5449_v0  ;;  %v1274_v56 = vsel %vm943_vm5, %v1273_v36, %v1272_v22  ;;  %v2442_v61 = vsel %vm6599_vm10, 0, %v2438_v19  ;;  %v5479_v24 = vld [vmem:[#allocation2 + $0x18] sm:$0xff]   ;;  %v5480_v55 = vld [vmem:[#allocation2 + $0x60] sm:$0xff]   ;;  %v5482_v45 = vld [vmem:[#allocation2 + $0x68] sm:$0xff]   ;;  %5065 = vmatprep.subr.bf16.mxu1 %v5878_v4  ;;  %v2886_v62 = vpack.c.b16 %v6741_v1, %v6741_v1  ;;  %v4159_v13 = vsub.s32 1, %v6150_v3 }
 0x163   : > { %4906 = vmatprep.subr.bf16.mxu0 %v5450_v6  ;;  %v1287_v14 = vpack.c.b16 %v1274_v56, %v1274_v56  ;;  %v5481_v38 = vld [vmem:[#allocation2 + $0x20] sm:$0xff]   ;;  %v5483_v48 = vld [vmem:[#allocation2 + $0x28] sm:$0xff]   ;;  %v5484_v5 = vld [vmem:[#allocation2 + $0x70] sm:$0xff]   ;;  %v2441_v50 = vsel %vm6599_vm10, 0, %v2437_v2  ;;  %5081 = vmatprep.mubr.msk.bf16.mxu1 %vm5879_vm14, %v5878_v4 }
 0x164   : > { %v5485_v12 = vld [vmem:[#allocation2 + $0x30] sm:$0xff]   ;;  %v5486_v0 = vld [vmem:[#allocation2 + $0x78] sm:$0xff]   ;;  %v5488_v43 = vld [vmem:[#allocation2 + $0x140] sm:$0xff]  }
 0x165   : > { %v1294_v54 = vsel %vm6667_vm13, %v1287_v14, 0  ;;  %v5487_v8 = vld [vmem:[#allocation2 + $0x38] sm:$0xff]   ;;  %v5504_v6 = vld [vmem:[%s7269_s4 + $0x40] sm:$0xff]   ;;  %v5490_v16 = vld [vmem:[#allocation2 + $0x148] sm:$0xff]  }
 0x166   : > { %4907 = vmatpush3.bf16.msra.mxu0 %v5451_v7  ;;  %v5489_v11 = vld [vmem:[#allocation2 + $0x100] sm:$0xff]   ;;  %5066 = vmatpush3.bf16.msra.mxu1 %v5504_v6  ;;  %v5505_v26 = vld [vmem:[%s7269_s4 + $0x48] sm:$0xff]   ;;  %v5492_v7 = vld [vmem:[#allocation2 + $0x150] sm:$0xff]  }
 0x167   : > { %4908 = vmatprep.subr.bf16.mxu0 %v5452_v32  ;;  %5067 = vmatprep.subr.bf16.mxu1 %v5878_v4  ;;  %v5491_v52 = vld [vmem:[#allocation2 + $0x108] sm:$0xff]   ;;  %v5506_v1 = vld [vmem:[%s7269_s4 + $0x50] sm:$0xff]   ;;  %v5494_v32 = vld [vmem:[#allocation2 + $0x158] sm:$0xff]  }
 0x168   : > { %v5493_v29 = vld [vmem:[#allocation2 + $0x110] sm:$0xff]   ;;  %v5507_v41 = vld [vmem:[%s7269_s4 + $0x58] sm:$0xff]   ;;  %v5508_v22 = vld [vmem:[%s7269_s4 + $0x60] sm:$0xff]  }
 0x169   : > { %v5495_v39 = vld [vmem:[#allocation2 + $0x118] sm:$0xff]   ;;  %v5498_v36 = vld [vmem:[#allocation2 + $0x168] sm:$0xff]  }
 0x16a   : > { %4909 = vmatpush3.bf16.msra.mxu0 %v5453_v35  ;;  %5068 = vmatpush3.bf16.msra.mxu1 %v5505_v26  ;;  %v5496_v35 = vld [vmem:[#allocation2 + $0x160] sm:$0xff]   ;;  %v5499_v56 = vld [vmem:[#allocation2 + $0x128] sm:$0xff]   ;;  %v5502_v14 = vld [vmem:[#allocation2 + $0x178] sm:$0xff]  }
 0x16b   : > { %4910 = vmatprep.subr.bf16.mxu0 %v5454_v46  ;;  %5069 = vmatprep.subr.bf16.mxu1 %v5878_v4  ;;  %v5497_v46 = vld [vmem:[#allocation2 + $0x120] sm:$0xff]  }
 0x16e   : > { %4911 = vmatpush3.bf16.msra.mxu0 %v5455_v40  ;;  %5070 = vmatpush3.bf16.msra.mxu1 %v5506_v1  ;;  %v5500_v40 = vld [vmem:[#allocation2 + $0x170] sm:$0xff]   ;;  %v5521_v1 = vld [vmem:[%s7269_s4 + $0x88] sm:$0xff]  }
 0x16f   : > { %4945 = vmatprep.subr.bf16.mxu0 %v5456_v27  ;;  %5071 = vmatprep.subr.bf16.mxu1 %v5878_v4  ;;  %v5501_v27 = vld [vmem:[#allocation2 + $0x130] sm:$0xff]  }
 0x171   : > { %1827 = vmatmul.mubr.bf16.vlgmr.msra.gmra.mrb[4].mxu0 %v1294_v54  ;;  %v5510_v54 = vld [vmem:[%s7269_s4 + $0x70] sm:$0xff]  }
 0x172   : > { %4946 = vmatpush3.bf16.msra.mxu0 %v5457_v60  ;;  %2680 = vmatprep.mubr.bf16.mxu0 %v2549_v34  ;;  %v5503_v60 = vld [vmem:[#allocation2 + $0x138] sm:$0xff]   ;;  %v2885_v34 = vpack.c.b16 %v6763_v51, %v6763_v51 }
 0x173   : > { %4947 = vmatprep.subr.bf16.mxu0 %v5458_v63  ;;  %5072 = vmatpush3.bf16.msra.mxu1 %v5507_v41  ;;  %v5509_v63 = vld [vmem:[%s7269_s4 + $0x68] sm:$0xff]   ;;  %v5511_v51 = vld [vmem:[%s7269_s4 + $0x78] sm:$0xff]   ;;  %v5524_v41 = vld [vmem:[%s7269_s4 + $0xa0] sm:$0xff]  }
 0x174   : > { %5073 = vmatprep.subr.bf16.mxu1 %v5878_v4 }
 0x176   : > { %4948 = vmatpush3.bf16.msra.mxu0 %v5459_v25 }
 0x177   : > { %4949 = vmatprep.subr.bf16.mxu0 %v5460_v49  ;;  %5074 = vmatpush3.bf16.msra.mxu1 %v5508_v22 }
 0x178   : > { %5075 = vmatprep.subr.bf16.mxu1 %v5878_v4 }
 0x17a   : > { %4950 = vmatpush3.bf16.msra.mxu0 %v5461_v57 }
 0x17b   : > { %4951 = vmatprep.subr.bf16.mxu0 %v5462_v37  ;;  %5076 = vmatpush3.bf16.msra.mxu1 %v5509_v63  ;;  %v5528_v63 = vld [vmem:[#allocation5 + $0x40] sm:$0xff]  }
 0x17c   : > { %5077 = vmatprep.subr.bf16.mxu1 %v5878_v4 }
 0x17e   : > { %4952 = vmatpush3.bf16.msra.mxu0 %v5463_v42 }
 0x17f   : > { %4953 = vmatprep.subr.bf16.mxu0 %v5464_v17  ;;  %5078 = vmatpush3.bf16.msra.mxu1 %v5510_v54 }
 0x180   : > { %5079 = vmatprep.subr.bf16.mxu1 %v5878_v4 }
 0x182   : > { %4954 = vmatpush3.bf16.msra.mxu0 %v5465_v9 }
 0x183   : > { %4955 = vmatprep.subr.bf16.mxu0 %v5466_v10  ;;  %5080 = vmatpush3.bf16.msra.mxu1 %v5511_v51  ;;  %v5529_v51 = vld [vmem:[#allocation5 + $0x48] sm:$0xff]  }
 0x184   : > { %5085 = vmatprep.subr.bf16.mxu1 %v5878_v4 }
 0x186   : > { %4956 = vmatpush3.bf16.msra.mxu0 %v5467_v21 }
 0x187   : > { %4957 = vmatprep.subr.bf16.mxu0 %v5468_v18 }
 0x18a   : > { %4958 = vmatpush3.bf16.msra.mxu0 %v5469_v15 }
 0x18b   : > { %4959 = vmatprep.subr.bf16.mxu0 %v5470_v58 }
 0x18e   : > { %4960 = vmatpush3.bf16.msra.mxu0 %v5471_v20 }
 0x18f   : > { %4967 = vmatprep.subr.bf16.mxu0 %v5472_v31 }
 0x191   : > { %2681 = vmatmul.mubr.bf16.vlgmr.msra.gmra.mrb[8].mxu0 %v2548_v28  ;;  %v4598_v28 = vld [vmem:[%s7268_s3] ss:$0 sm:$0xff] }
 0x192   : > { %4968 = vmatpush3.bf16.msra.mxu0 %v5473_v23  ;;  %2816 = vmatprep.mubr.bf16.mxu0 %v2442_v61  ;;  %v4599_v61 = vld [vmem:[%s7268_s3 + $0x1] ss:$0 sm:$0xff] }
 0x193   : > { %4969 = vmatprep.subr.bf16.mxu0 %v5474_v33 }
 0x196   : > { %4970 = vmatpush3.bf16.msra.mxu0 %v5475_v47 }
 0x197   : > { %4971 = vmatprep.subr.bf16.mxu0 %v5476_v44 }
 0x19a   : > { %4972 = vmatpush3.bf16.msra.mxu0 %v5477_v30 }
 0x19b   : > { %4973 = vmatprep.subr.bf16.mxu0 %v5478_v59  ;;  %v5512_v59 = vld [vmem:[%s7269_s4] sm:$0xff]  }
 0x19e   : > { %4974 = vmatpush3.bf16.msra.mxu0 %v5479_v24 }
 0x19f   : > { %4975 = vmatprep.subr.bf16.mxu0 %v5480_v55  ;;  %v5513_v55 = vld [vmem:[%s7269_s4 + $0x8] sm:$0xff]  }
 0x1a2   : > { %4976 = vmatpush3.bf16.msra.mxu0 %v5481_v38  ;;  %v5514_v38 = vld [vmem:[%s7269_s4 + $0x10] sm:$0xff]  }
 0x1a3   : > { %4977 = vmatprep.subr.bf16.mxu0 %v5482_v45  ;;  %v5515_v45 = vld [vmem:[%s7269_s4 + $0x18] sm:$0xff]  }
 0x1a6   : > { %4978 = vmatpush3.bf16.msra.mxu0 %v5483_v48  ;;  %v5516_v48 = vld [vmem:[%s7269_s4 + $0x20] sm:$0xff]  }
 0x1a7   : > { %4979 = vmatprep.subr.bf16.mxu0 %v5484_v5  ;;  %v5517_v5 = vld [vmem:[%s7269_s4 + $0x28] sm:$0xff]  }
 0x1aa   : > { %4980 = vmatpush3.bf16.msra.mxu0 %v5485_v12 }
 0x1ab   : > { %4981 = vmatprep.subr.bf16.mxu0 %v5486_v0 }
 0x1ae   : > { %4982 = vmatpush3.bf16.msra.mxu0 %v5487_v8 }
 0x1af   : > { %4989 = vmatprep.subr.bf16.mxu0 %v5488_v43 }
 0x1b1   : > { %2817 = vmatmul.mubr.bf16.vlgmr.msra.gmra.mrb[12].mxu0 %v2441_v50  ;;  %v5518_v50 = vld [vmem:[%s7269_s4 + $0x30] sm:$0xff]  }
 0x1b2   : > { %4990 = vmatpush3.bf16.msra.mxu0 %v5489_v11  ;;  %3017 = vmatprep.mubr.bf16.mxu0 %v2886_v62  ;;  %v5519_v62 = vld [vmem:[%s7269_s4 + $0x38] sm:$0xff]  }
 0x1b3   : > { %4991 = vmatprep.subr.bf16.mxu0 %v5490_v16 }
 0x1b6   : > { %4992 = vmatpush3.bf16.msra.mxu0 %v5491_v52  ;;  %v5520_v52 = vld [vmem:[%s7269_s4 + $0x80] sm:$0xff]  }
 0x1b7   : > { %4993 = vmatprep.subr.bf16.mxu0 %v5492_v7 }
 0x1ba   : > { %4994 = vmatpush3.bf16.msra.mxu0 %v5493_v29  ;;  %v5522_v29 = vld [vmem:[%s7269_s4 + $0x90] sm:$0xff]  }
 0x1bb   : > { %4995 = vmatprep.subr.bf16.mxu0 %v5494_v32  ;;  %v5523_v32 = vld [vmem:[%s7269_s4 + $0x98] sm:$0xff]  }
 0x1be   : > { %4996 = vmatpush3.bf16.msra.mxu0 %v5495_v39  ;;  %v5525_v39 = vld [vmem:[%s7269_s4 + $0xa8] sm:$0xff]  }
 0x1bf   : > { %4997 = vmatprep.subr.bf16.mxu0 %v5496_v35 }
 0x1c2   : > { %4998 = vmatpush3.bf16.msra.mxu0 %v5497_v46 }
 0x1c3   : > { %4999 = vmatprep.subr.bf16.mxu0 %v5498_v36 }
 0x1c6   : > { %5000 = vmatpush3.bf16.msra.mxu0 %v5499_v56 }
 0x1c7   : > { %5001 = vmatprep.subr.bf16.mxu0 %v5500_v40  ;;  %v5526_v40 = vld [vmem:[%s7269_s4 + $0xb0] sm:$0xff]  }
 0x1ca   : > { %5002 = vmatpush3.bf16.msra.mxu0 %v5501_v27 }
 0x1cb   : > { %5003 = vmatprep.subr.bf16.mxu0 %v5502_v14 }
 0x1ce   : > { %5004 = vmatpush3.bf16.msra.mxu0 %v5503_v60  ;;  %v5527_v60 = vld [vmem:[%s7269_s4 + $0xb8] sm:$0xff]  }
 0x1cf   : > { %5185 = vmatprep.subr.bf16.mxu0 %v5878_v4 }
 0x1d1   : > { %3018 = vmatmul.mubr.bf16.vlgmr.msra.gmra.mrb[16].mxu0 %v2885_v34 }
 0x1d2   : > { %5201 = vmatprep.mubr.msk.bf16.mxu0 %vm5879_vm14, %v5878_v4 }
 0x224   : > { %v4868_v25 = vpop.f32.mrb[0].mxu0 }
 0x225   : > { %v4869_v49 = vpop.f32.mrb[1].mxu0 }
 0x226   : > { %v4870_v57 = vadd.f32 %v4869_v49, %v4868_v25  ;;  %v4871_v37 = vpop.f32.mrb[2].mxu0  ;;  %v5530_v25 = vld [vmem:[#allocation5 + $0x50] sm:$0xff]   ;;  %v5531_v49 = vld [vmem:[#allocation5 + $0x58] sm:$0xff]  }
 0x227   : > { %v4872_v42 = vpop.f32.mrb[3].mxu0  ;;  %v5533_v37 = vld [vmem:[#allocation5 + $0x68] sm:$0xff]  }
 0x228   : > { %v4890_v17 = vpop.f32.mrb[0].mxu1 }
 0x229   : > { %v4891_v9 = vpop.f32.mrb[1].mxu1 }
 0x22a   : > { %v4892_v10 = vadd.f32 %v4891_v9, %v4890_v17  ;;  %v4893_v21 = vpop.f32.mrb[2].mxu1 }
 0x22b   : > { %v4894_v18 = vpop.f32.mrb[3].mxu1  ;;  %v4706_v21 = vld [vmem:[%s7272_s7] ss:$0 sm:$0xff] }
 0x22c   : > { %v1660_v15 = vadd.f32 %v4892_v10, %v4870_v57  ;;  %v5532_v57 = vld [vmem:[#allocation5 + $0x60] sm:$0xff]  }
 0x244   : > { %v4912_v58 = vpop.f32.mrb[4].mxu0 }
 0x245   : > { %v4913_v20 = vpop.f32.mrb[5].mxu0 }
 0x246   : > { %v4914_v31 = vadd.f32 %v4913_v20, %v4912_v58  ;;  %v4915_v19 = vpop.f32.mrb[6].mxu0  ;;  %v4707_v20 = vld [vmem:[%s7272_s7 + $0x1] ss:$0 sm:$0xff] }
 0x247   : > { %v4916_v23 = vpop.f32.mrb[7].mxu0  ;;  %v5535_v19 = vld [vmem:[#allocation5 + $0x78] sm:$0xff]  }
 0x248   : > { %v1834_v33 = vadd.f32 %v4914_v31, %v1660_v15  ;;  %v5534_v15 = vld [vmem:[#allocation5 + $0x70] sm:$0xff]  }
 0x24a   : > { %v1840_v47 = vmul.f32 %v4598_v28, %v1834_v33  ;;  %v5536_v33 = vld [vmem:[#allocation5] sm:$0xff]  }
 0x24c   : > { %v1846_v44 = vadd.f32 %v4599_v61, %v1840_v47  ;;  %v5537_v61 = vld [vmem:[#allocation5 + $0x8] sm:$0xff]   ;;  %v5538_v47 = vld [vmem:[#allocation5 + $0x10] sm:$0xff]  }
 0x24e   : > { %v1847_v30 = vmax.f32 %v1846_v44, 0.0  ;;  %v5539_v44 = vld [vmem:[#allocation5 + $0x18] sm:$0xff]  }
 0x250   : > { %v6843_v24 = vpack.c.bf16 %v1847_v30, %v1847_v30  ;;  %v5540_v30 = vld [vmem:[#allocation5 + $0x20] sm:$0xff]  }
 0x252   : > { %5082 = vmatmul.mubr.bf16.vlgmr.msra.gmra.mrb[4].mxu1 %v6843_v24  ;;  %v1850_v8 = vshrl.u32 %v6843_v24, 16  ;;  %v1853_v16 = vshll.u32 %v6843_v24, 16 }
 0x253   : > { %5086 = vmatpush3.bf16.msra.mxu1 %v5512_v59  ;;  %5101 = vmatprep.mubr.msk.bf16.mxu1 %vm5879_vm14, %v5878_v4  ;;  %v5541_v59 = vld [vmem:[#allocation5 + $0x28] sm:$0xff]  }
 0x254   : > { %5087 = vmatprep.subr.bf16.mxu1 %v5878_v4  ;;  %v1852_v11 = vrot.slane %v1850_v8, 7  ;;  %v1858_v14 = vrot.slane %v1853_v16, 1 }
 0x256   : > { %v1855_v26 = vor.u32 %v1853_v16, %v1852_v11  ;;  %v1859_v34 = vor.u32 %v1858_v14, %v1850_v8  ;;  %v5545_v8 = vld [vmem:[#allocation5 + $0x88] sm:$0xff]   ;;  %v5550_v11 = vld [vmem:[#allocation5 + $0xb0] sm:$0xff]   ;;  %v5552_v16 = vld [vmem:[#allocation7 + $0x40] sm:$0xff]  }
 0x257   : > { %5088 = vmatpush3.bf16.msra.mxu1 %v5513_v55  ;;  %v5542_v55 = vld [vmem:[#allocation5 + $0x30] sm:$0xff]   ;;  %5186 = vmatpush3.bf16.msra.mxu0 %v5552_v16  ;;  %v5578_v14 = vld [vmem:[%s7277_s12 + $0x84] ss:$8 sps:$4 sm:$0xff]  }
 0x258   : > { %5089 = vmatprep.subr.bf16.mxu1 %v5878_v4  ;;  %v1857_v7 = vsel %vm6599_vm10, 0, %v1855_v26  ;;  %v1861_v54 = vsel %vm6667_vm13, %v1859_v34, 0  ;;  %v5551_v26 = vld [vmem:[#allocation5 + $0xb8] sm:$0xff]   ;;  %5187 = vmatprep.subr.bf16.mxu0 %v5878_v4 }
 0x259   : > { %v5579_v34 = vld [vmem:[%s7277_s12 + $0x90] ss:$8 sps:$4 sm:$0xff]  }
 0x25b   : > { %5090 = vmatpush3.bf16.msra.mxu1 %v5514_v38 }
 0x25c   : > { %5091 = vmatprep.subr.bf16.mxu1 %v5878_v4 }
 0x25f   : > { %5092 = vmatpush3.bf16.msra.mxu1 %v5515_v45  ;;  %v5543_v45 = vld [vmem:[#allocation5 + $0x38] sm:$0xff]  }
 0x260   : > { %5093 = vmatprep.subr.bf16.mxu1 %v5878_v4 }
 0x263   : > { %5094 = vmatpush3.bf16.msra.mxu1 %v5516_v48 }
 0x264   : > { %v4961_v12 = vpop.f32.mrb[8].mxu0  ;;  %5095 = vmatprep.subr.bf16.mxu1 %v5878_v4 }
 0x265   : > { %v4962_v0 = vpop.f32.mrb[9].mxu0 }
 0x266   : > { %v4963_v2 = vadd.f32 %v4962_v0, %v4961_v12  ;;  %v4964_v43 = vpop.f32.mrb[10].mxu0  ;;  %v5544_v12 = vld [vmem:[#allocation5 + $0x80] sm:$0xff]  }
 0x267   : > { %5096 = vmatpush3.bf16.msra.mxu1 %v5517_v5  ;;  %v4965_v6 = vpop.f32.mrb[11].mxu0  ;;  %v5547_v43 = vld [vmem:[#allocation5 + $0x98] sm:$0xff]  }
 0x268   : > { %5097 = vmatprep.subr.bf16.mxu1 %v5878_v4  ;;  %v5548_v6 = vld [vmem:[#allocation5 + $0xa0] sm:$0xff]  }
 0x26b   : > { %5098 = vmatpush3.bf16.msra.mxu1 %v5518_v50  ;;  %v5549_v50 = vld [vmem:[#allocation5 + $0xa8] sm:$0xff]  }
 0x26c   : > { %5099 = vmatprep.subr.bf16.mxu1 %v5878_v4 }
 0x26f   : > { %5100 = vmatpush3.bf16.msra.mxu1 %v5519_v62 }
 0x270   : > { %5105 = vmatprep.subr.bf16.mxu1 %v5878_v4 }
 0x272   : > { %5102 = vmatmul.mubr.bf16.vlgmr.msra.gmra.mrb[4].mxu1 %v1857_v7 }
 0x273   : > { %5106 = vmatpush3.bf16.msra.mxu1 %v5520_v52  ;;  %5121 = vmatprep.mubr.msk.bf16.mxu1 %vm5879_vm14, %v5878_v4  ;;  %v5553_v52 = vld [vmem:[#allocation7 + $0x48] sm:$0xff]  }
 0x274   : > { %5107 = vmatprep.subr.bf16.mxu1 %v5878_v4  ;;  %5188 = vmatpush3.bf16.msra.mxu0 %v5553_v52  ;;  %v5596_v52 = vld [vmem:[%s7277_s12 + $0xe4] ss:$8 sps:$4 sm:$0xff]  }
 0x275   : > { %5189 = vmatprep.subr.bf16.mxu0 %v5878_v4 }
 0x277   : > { %5108 = vmatpush3.bf16.msra.mxu1 %v5521_v1  ;;  %v5554_v1 = vld [vmem:[#allocation7 + $0x50] sm:$0xff]  }
 0x278   : > { %5109 = vmatprep.subr.bf16.mxu1 %v5878_v4  ;;  %5190 = vmatpush3.bf16.msra.mxu0 %v5554_v1  ;;  %v5597_v1 = vld [vmem:[%s7277_s12 + $0xf0] ss:$8 sps:$4 sm:$0xff]  }
 0x279   : > { %5191 = vmatprep.subr.bf16.mxu0 %v5878_v4 }
 0x27b   : > { %5110 = vmatpush3.bf16.msra.mxu1 %v5522_v29 }
 0x27c   : > { %5111 = vmatprep.subr.bf16.mxu1 %v5878_v4 }
 0x27f   : > { %5112 = vmatpush3.bf16.msra.mxu1 %v5523_v32  ;;  %v5555_v32 = vld [vmem:[#allocation7 + $0x58] sm:$0xff]  }
 0x280   : > { %5113 = vmatprep.subr.bf16.mxu1 %v5878_v4  ;;  %5192 = vmatpush3.bf16.msra.mxu0 %v5555_v32  ;;  %v4184_v32 = vld [vmem:[#allocation8] sm:$0xff] }
 0x281   : > { %5193 = vmatprep.subr.bf16.mxu0 %v5878_v4 }
 0x283   : > { %5114 = vmatpush3.bf16.msra.mxu1 %v5524_v41  ;;  %v5556_v41 = vld [vmem:[#allocation7 + $0x60] sm:$0xff]  }
 0x284   : > { %v4983_v35 = vpop.f32.mrb[12].mxu0  ;;  %5115 = vmatprep.subr.bf16.mxu1 %v5878_v4  ;;  %5194 = vmatpush3.bf16.msra.mxu0 %v5556_v41  ;;  %v4185_v41 = vld [vmem:[#allocation8 + $0x8] sm:$0xff] }
 0x285   : > { %v4984_v22 = vpop.f32.mrb[13].mxu0  ;;  %5195 = vmatprep.subr.bf16.mxu0 %v5878_v4 }
 0x286   : > { %v4985_v46 = vadd.f32 %v4984_v22, %v4983_v35  ;;  %v4986_v36 = vpop.f32.mrb[14].mxu0  ;;  %v5558_v35 = vld [vmem:[#allocation7 + $0x70] sm:$0xff]   ;;  %v5559_v22 = vld [vmem:[#allocation7 + $0x78] sm:$0xff]  }
 0x287   : > { %5116 = vmatpush3.bf16.msra.mxu1 %v5525_v39  ;;  %v4987_v56 = vpop.f32.mrb[15].mxu0  ;;  %v5557_v39 = vld [vmem:[#allocation7 + $0x68] sm:$0xff]  }
 0x288   : > { %v2819_v27 = vadd.f32 %v4985_v46, %v4963_v2  ;;  %5117 = vmatprep.subr.bf16.mxu1 %v5878_v4  ;;  %v5546_v2 = vld [vmem:[#allocation5 + $0x90] sm:$0xff]   ;;  %5196 = vmatpush3.bf16.msra.mxu0 %v5557_v39 }
 0x289   : > { %5197 = vmatprep.subr.bf16.mxu0 %v5878_v4  ;;  %v4186_v39 = vld [vmem:[#allocation8 + $0x10] sm:$0xff] }
 0x28b   : > { %5118 = vmatpush3.bf16.msra.mxu1 %v5526_v40 }
 0x28c   : > { %5119 = vmatprep.subr.bf16.mxu1 %v5878_v4  ;;  %5198 = vmatpush3.bf16.msra.mxu0 %v5558_v35  ;;  %v5881_v35 = vmov 0.0|0.0  }
 0x28d   : > { %5199 = vmatprep.subr.bf16.mxu0 %v5878_v4 }
 0x28f   : > { %5120 = vmatpush3.bf16.msra.mxu1 %v5527_v60  ;;  %v5581_v60 = vld [vmem:[%s7277_s12 + $0x94] ss:$8 sps:$4 sm:$0xff]  }
 0x290   : > { %5125 = vmatprep.subr.bf16.mxu1 %v5878_v4  ;;  %5200 = vmatpush3.bf16.msra.mxu0 %v5559_v22  ;;  %v5246_v22 = vpack.c.bf16 %v4185_v41, %v4184_v32  ;;  %v5626_v32 = vld [vmem:[%s7277_s12 + $0x104] ss:$8 sps:$4 sm:$0xff]  }
 0x291   : > { %5205 = vmatprep.subr.bf16.mxu0 %v5878_v4 }
 0x292   : > { %5122 = vmatmul.mubr.bf16.vlgmr.msra.gmra.mrb[4].mxu1 %v1861_v54  ;;  %v5582_v54 = vld [vmem:[%s7277_s12 + $0xa0] ss:$8 sps:$4 sm:$0xff]  }
 0x293   : > { %5126 = vmatpush3.bf16.msra.mxu1 %v5528_v63  ;;  %5141 = vmatprep.mubr.msk.bf16.mxu1 %vm5879_vm14, %v5878_v4  ;;  %v5584_v63 = vld [vmem:[%s7277_s12 + $0xa4] ss:$8 sps:$4 sm:$0xff]  }
 0x294   : > { %5127 = vmatprep.subr.bf16.mxu1 %v5878_v4 }
 0x297   : > { %5128 = vmatpush3.bf16.msra.mxu1 %v5529_v51  ;;  %v5587_v51 = vld [vmem:[%s7277_s12 + $0xb4] ss:$8 sps:$4 sm:$0xff]  }
 0x298   : > { %5129 = vmatprep.subr.bf16.mxu1 %v5878_v4 }
 0x29b   : > { %5130 = vmatpush3.bf16.msra.mxu1 %v5530_v25  ;;  %v5585_v25 = vld [vmem:[%s7277_s12 + $0xb0] ss:$8 sps:$4 sm:$0xff]  }
 0x29c   : > { %5131 = vmatprep.subr.bf16.mxu1 %v5878_v4 }
 0x29f   : > { %5132 = vmatpush3.bf16.msra.mxu1 %v5531_v49  ;;  %v5590_v49 = vld [vmem:[%s7277_s12 + $0xc4] ss:$8 sps:$4 sm:$0xff]  }
 0x2a0   : > { %5133 = vmatprep.subr.bf16.mxu1 %v5878_v4 }
 0x2a3   : > { %5134 = vmatpush3.bf16.msra.mxu1 %v5532_v57  ;;  %v5588_v57 = vld [vmem:[%s7277_s12 + $0xc0] ss:$8 sps:$4 sm:$0xff]  }
 0x2a4   : > { %v5005_v42 = vpop.f32.mrb[16].mxu0  ;;  %5135 = vmatprep.subr.bf16.mxu1 %v5878_v4 }
 0x2a5   : > { %v5006_v17 = vpop.f32.mrb[17].mxu0 }
 0x2a6   : > { %v5007_v9 = vadd.f32 %v5006_v17, %v5005_v42  ;;  %v5008_v10 = vpop.f32.mrb[18].mxu0  ;;  %v5591_v42 = vld [vmem:[%s7277_s12 + $0xd0] ss:$8 sps:$4 sm:$0xff]   ;;  %v4732_v17 = vld [vmem:[%s7274_s9] ss:$0 sm:$0xff] }
 0x2a7   : > { %5136 = vmatpush3.bf16.msra.mxu1 %v5533_v37  ;;  %v5009_v18 = vpop.f32.mrb[19].mxu0  ;;  %v5593_v37 = vld [vmem:[%s7277_s12 + $0xd4] ss:$8 sps:$4 sm:$0xff]   ;;  %v4733_v10 = vld [vmem:[%s7274_s9 + $0x1] ss:$0 sm:$0xff] }
 0x2a8   : > { %v3025_v58 = vadd.f32 %v5007_v9, %v2819_v27  ;;  %5137 = vmatprep.subr.bf16.mxu1 %v5878_v4  ;;  %v5576_v27 = vld [vmem:[%s7277_s12 + $0x80] ss:$8 sps:$4 sm:$0xff]  }
 0x2aa   : > { %v3031_v31 = vmul.f32 %v4706_v21, %v3025_v58 }
 0x2ab   : > { %5138 = vmatpush3.bf16.msra.mxu1 %v5534_v15 }
 0x2ac   : > { %v3037_v28 = vadd.f32 %v4707_v20, %v3031_v31  ;;  %5139 = vmatprep.subr.bf16.mxu1 %v5878_v4 }
 0x2ae   : > { %v6932_v23 = vpack.c.bf16 %v3037_v28, %v3037_v28 }
 0x2af   : > { %5140 = vmatpush3.bf16.msra.mxu1 %v5535_v19  ;;  %v5560_v19 = vld [vmem:[#allocation7] sm:$0xff]  }
 0x2b0   : > { %5145 = vmatprep.subr.bf16.mxu1 %v5878_v4  ;;  %v3040_v24 = vshrl.u32 %v6932_v23, 16  ;;  %v3043_v48 = vshll.u32 %v6932_v23, 16 }
 0x2b2   : > { %5142 = vmatmul.mubr.bf16.vlgmr.msra.gmra.mrb[8].mxu1 %v6932_v23  ;;  %v3042_v38 = vrot.slane %v3040_v24, 7  ;;  %v3048_v62 = vrot.slane %v3043_v48, 1  ;;  %v5561_v23 = vld [vmem:[#allocation7 + $0x8] sm:$0xff]  }
 0x2b3   : > { %5146 = vmatpush3.bf16.msra.mxu1 %v5536_v33  ;;  %5161 = vmatprep.mubr.msk.bf16.mxu1 %vm5879_vm14, %v5878_v4  ;;  %v5562_v33 = vld [vmem:[#allocation7 + $0x10] sm:$0xff]  }
 0x2b4   : > { %5147 = vmatprep.subr.bf16.mxu1 %v5878_v4  ;;  %v3045_v5 = vor.u32 %v3043_v48, %v3042_v38  ;;  %v3049_v7 = vor.u32 %v3048_v62, %v3040_v24  ;;  %v5568_v48 = vld [vmem:[#allocation7 + $0x80] sm:$0xff]  }
 0x2b6   : > { %v3047_v0 = vsel %vm6599_vm10, 0, %v3045_v5  ;;  %v3051_v29 = vsel %vm6667_vm13, %v3049_v7, 0  ;;  %v5599_v7 = vld [vmem:[%s7277_s12 + $0xf4] ss:$8 sps:$4 sm:$0xff]  }
 0x2b7   : > { %5148 = vmatpush3.bf16.msra.mxu1 %v5537_v61  ;;  %v5563_v61 = vld [vmem:[#allocation7 + $0x18] sm:$0xff]  }
 0x2b8   : > { %5149 = vmatprep.subr.bf16.mxu1 %v5878_v4 }
 0x2bb   : > { %5150 = vmatpush3.bf16.msra.mxu1 %v5538_v47  ;;  %v5564_v47 = vld [vmem:[#allocation7 + $0x20] sm:$0xff]  }
 0x2bc   : > { %5151 = vmatprep.subr.bf16.mxu1 %v5878_v4 }
 0x2bf   : > { %5152 = vmatpush3.bf16.msra.mxu1 %v5539_v44  ;;  %v5565_v44 = vld [vmem:[#allocation7 + $0x28] sm:$0xff]  }
 0x2c0   : > { %5153 = vmatprep.subr.bf16.mxu1 %v5878_v4 }
 0x2c3   : > { %5154 = vmatpush3.bf16.msra.mxu1 %v5540_v30 }
 0x2c4   : > { %5155 = vmatprep.subr.bf16.mxu1 %v5878_v4 }
 0x2c7   : > { %5156 = vmatpush3.bf16.msra.mxu1 %v5541_v59  ;;  %v5566_v59 = vld [vmem:[#allocation7 + $0x30] sm:$0xff]  }
 0x2c8   : > { %5157 = vmatprep.subr.bf16.mxu1 %v5878_v4 }
 0x2cb   : > { %5158 = vmatpush3.bf16.msra.mxu1 %v5542_v55  ;;  %v5567_v55 = vld [vmem:[#allocation7 + $0x38] sm:$0xff]  }
 0x2cc   : > { %5159 = vmatprep.subr.bf16.mxu1 %v5878_v4 }
 0x2cf   : > { %5160 = vmatpush3.bf16.msra.mxu1 %v5543_v45 }
 0x2d0   : > { %5165 = vmatprep.subr.bf16.mxu1 %v5878_v4 }
 0x2d2   : > { %5162 = vmatmul.mubr.bf16.vlgmr.msra.gmra.mrb[8].mxu1 %v3047_v0  ;;  %v5570_v0 = vld [vmem:[#allocation7 + $0x90] sm:$0xff]  }
 0x2d3   : > { %5166 = vmatpush3.bf16.msra.mxu1 %v5544_v12  ;;  %5181 = vmatprep.mubr.msk.bf16.mxu1 %vm5879_vm14, %v5878_v4  ;;  %v5569_v12 = vld [vmem:[#allocation7 + $0x88] sm:$0xff]  }
 0x2d4   : > { %5167 = vmatprep.subr.bf16.mxu1 %v5878_v4 }
 0x2d7   : > { %5168 = vmatpush3.bf16.msra.mxu1 %v5545_v8  ;;  %v5571_v8 = vld [vmem:[#allocation7 + $0x98] sm:$0xff]  }
 0x2d8   : > { %5169 = vmatprep.subr.bf16.mxu1 %v5878_v4 }
 0x2db   : > { %5170 = vmatpush3.bf16.msra.mxu1 %v5546_v2  ;;  %v5572_v2 = vld [vmem:[#allocation7 + $0xa0] sm:$0xff]  }
 0x2dc   : > { %5171 = vmatprep.subr.bf16.mxu1 %v5878_v4 }
 0x2df   : > { %5172 = vmatpush3.bf16.msra.mxu1 %v5547_v43  ;;  %v5573_v43 = vld [vmem:[#allocation7 + $0xa8] sm:$0xff]  }
 0x2e0   : > { %5173 = vmatprep.subr.bf16.mxu1 %v5878_v4 }
 0x2e3   : > { %5174 = vmatpush3.bf16.msra.mxu1 %v5548_v6  ;;  %v5574_v6 = vld [vmem:[#allocation7 + $0xb0] sm:$0xff]  }
 0x2e4   : > { %5175 = vmatprep.subr.bf16.mxu1 %v5878_v4 }
 0x2e7   : > { %5176 = vmatpush3.bf16.msra.mxu1 %v5549_v50 }
 0x2e8   : > { %5177 = vmatprep.subr.bf16.mxu1 %v5878_v4 }
 0x2eb   : > { %5178 = vmatpush3.bf16.msra.mxu1 %v5550_v11  ;;  %v5575_v11 = vld [vmem:[#allocation7 + $0xb8] sm:$0xff]  }
 0x2ec   : > { %5179 = vmatprep.subr.bf16.mxu1 %v5878_v4 }
 0x2ef   : > { %5180 = vmatpush3.bf16.msra.mxu1 %v5551_v26  ;;  %v5594_v26 = vld [vmem:[%s7277_s12 + $0xe0] ss:$8 sps:$4 sm:$0xff]  }
 0x2f0   : > { %3849 = vmatprep.subr.bf16.mxu1 %v5578_v14 }
 0x2f2   : > { %5182 = vmatmul.mubr.bf16.vlgmr.msra.gmra.mrb[8].mxu1 %v3051_v29  ;;  %v5602_v29 = vld [vmem:[%s7277_s12 + $0x4] ss:$8 sps:$4 sm:$0xff]  }
 0x2f3   : > { %3850 = vmatpush1.bf16.msra.mxu1 %v5576_v27  ;;  %v4189_v27 = vld [vmem:[#allocation8 + $0x28] sm:$0xff] }
 0x2f4   : > { %3851 = vmatprep.subr.bf16.mxu1 %v5581_v60  ;;  %v4190_v60 = vld [vmem:[#allocation8 + $0x30] sm:$0xff] }
 0x2f7   : > { %3852 = vmatpush1.bf16.msra.mxu1 %v5579_v34  ;;  %v4191_v34 = vld [vmem:[#allocation8 + $0x38] sm:$0xff] }
 0x2f8   : > { %3853 = vmatprep.subr.bf16.mxu1 %v5584_v63  ;;  %v5255_v63 = vpack.c.bf16 %v4191_v34, %v4190_v60  ;;  %v5636_v60 = vld [vmem:[%s7277_s12 + $0x140] ss:$8 sps:$4 sm:$0xff]   ;;  %v5641_v34 = vld [vmem:[%s7277_s12 + $0x154] ss:$8 sps:$4 sm:$0xff]  }
 0x2fb   : > { %3854 = vmatpush1.bf16.msra.mxu1 %v5582_v54  ;;  %v4192_v54 = vld [vmem:[#allocation8 + $0x40] sm:$0xff] }
 0x2fc   : > { %3855 = vmatprep.subr.bf16.mxu1 %v5587_v51  ;;  %v4193_v51 = vld [vmem:[#allocation8 + $0x48] sm:$0xff] }
 0x2ff   : > { %3856 = vmatpush1.bf16.msra.mxu1 %v5585_v25  ;;  %v5258_v25 = vpack.c.bf16 %v4193_v51, %v4192_v54  ;;  %v5644_v54 = vld [vmem:[%s7277_s12 + $0x164] ss:$8 sps:$4 sm:$0xff]   ;;  %v5642_v51 = vld [vmem:[%s7277_s12 + $0x160] ss:$8 sps:$4 sm:$0xff]  }
 0x300   : > { %3857 = vmatprep.subr.bf16.mxu1 %v5590_v49  ;;  %v4194_v49 = vld [vmem:[#allocation8 + $0x50] sm:$0xff] }
 0x303   : > { %3858 = vmatpush1.bf16.msra.mxu1 %v5588_v57  ;;  %v4195_v57 = vld [vmem:[#allocation8 + $0x58] sm:$0xff] }
 0x304   : > { %3859 = vmatprep.subr.bf16.mxu1 %v5593_v37  ;;  %v5261_v37 = vpack.c.bf16 %v4195_v57, %v4194_v49  ;;  %v5645_v57 = vld [vmem:[%s7277_s12 + $0x170] ss:$8 sps:$4 sm:$0xff]  }
 0x307   : > { %3860 = vmatpush1.bf16.msra.mxu1 %v5591_v42  ;;  %v4196_v42 = vld [vmem:[#allocation8 + $0x60] sm:$0xff] }
 0x308   : > { %3861 = vmatprep.subr.bf16.mxu1 %v5596_v52  ;;  %v5623_v52 = vld [vmem:[%s7277_s12 + $0x74] ss:$8 sps:$4 sm:$0xff]  }
 0x30b   : > { %3862 = vmatpush1.bf16.msra.mxu1 %v5594_v26  ;;  %v5618_v26 = vld [vmem:[%s7277_s12 + $0x60] ss:$8 sps:$4 sm:$0xff]  }
 0x30c   : > { %3863 = vmatprep.subr.bf16.mxu1 %v5599_v7 }
 0x30f   : > { %3864 = vmatpush1.bf16.msra.mxu1 %v5597_v1  ;;  %v5621_v1 = vld [vmem:[%s7277_s12 + $0x70] ss:$8 sps:$4 sm:$0xff]  }
 0x310   : > { %3970 = vmatprep.subr.bf16.mxu1 %v5602_v29 }
 0x365   : > { %v6969_v46 = vpop.f32.mrb[4].mxu1 }
 0x366   : > { %v5123_v36 = vpop.f32.mrb[5].mxu1 }
 0x367   : > { %v2173_v56 = vpop.f32.mrb[6].mxu1  ;;  %v4187_v36 = vld [vmem:[#allocation8 + $0x18] sm:$0xff] }
 0x368   : > { %v5124_v40 = vpop.f32.mrb[7].mxu1  ;;  %v5249_v56 = vpack.c.bf16 %v4187_v36, %v4186_v39  ;;  %v5624_v39 = vld [vmem:[%s7277_s12 + $0x100] ss:$8 sps:$4 sm:$0xff]  }
 0x369   : > { %v4188_v40 = vld [vmem:[#allocation8 + $0x20] sm:$0xff] }
 0x36a   : > { %v5252_v14 = vpack.c.bf16 %v4189_v27, %v4188_v40  ;;  %v5632_v40 = vld [vmem:[%s7277_s12 + $0x124] ss:$8 sps:$4 sm:$0xff]   ;;  %v5630_v27 = vld [vmem:[%s7277_s12 + $0x120] ss:$8 sps:$4 sm:$0xff]  }
 0x3c5   : > { %v3360_v9 = vpop.f32.mrb[8].mxu1 }
 0x3c6   : > { %v3372_v21 = vmul.f32 %v4732_v17, %v3360_v9  ;;  %v5183_v18 = vpop.f32.mrb[9].mxu1  ;;  %v4197_v17 = vld [vmem:[#allocation8 + $0x68] sm:$0xff] }
 0x3c7   : > { %v3363_v15 = vpop.f32.mrb[10].mxu1  ;;  %v5264_v9 = vpack.c.bf16 %v4197_v17, %v4196_v42  ;;  %v4204_v17 = vld [vmem:[#allocation8 + $0xa0] sm:$0xff] }
 0x3c8   : > { %v3378_v58 = vadd.f32 %v4733_v10, %v3372_v21  ;;  %v5184_v20 = vpop.f32.mrb[11].mxu1  ;;  %v4198_v10 = vld [vmem:[#allocation8 + $0x70] sm:$0xff]  ;;  %v4199_v21 = vld [vmem:[#allocation8 + $0x78] sm:$0xff]  ;;  %v4200_v15 = vld [vmem:[#allocation8 + $0x80] sm:$0xff] }
 0x3c9   : > { %v5267_v18 = vpack.c.bf16 %v4199_v21, %v4198_v10  ;;  %v4206_v10 = vld [vmem:[#allocation8 + $0xb0] sm:$0xff] }
 0x3ca   : > { %v3379_v31 = vmax.f32 %v3378_v58, 0.0  ;;  %v4201_v58 = vld [vmem:[#allocation8 + $0x88] sm:$0xff] }
 0x3cb   : > { %v5270_v20 = vpack.c.bf16 %v4201_v58, %v4200_v15  ;;  %v4155_v58 = vsub.s32 0, %v6150_v3 }
 0x3cc   : > { %v3380_v28 = vpack.c.bf16 %v3379_v31, %v3379_v31  ;;  %v4202_v31 = vld [vmem:[#allocation8 + $0x90] sm:$0xff] }
 0x3ce   : > { %5202 = vmatmul.mubr.bf16.vlgmr.msra.gmra.mrb[20].mxu0 %v3380_v28  ;;  %v3382_v30 = vshrl.u32 %v3380_v28, 16  ;;  %v3385_v38 = vshll.u32 %v3380_v28, 16 }
 0x3cf   : > { %5206 = vmatpush3.bf16.msra.mxu0 %v5560_v19  ;;  %5221 = vmatprep.mubr.msk.bf16.mxu0 %vm5879_vm14, %v5878_v4  ;;  %v4203_v19 = vld [vmem:[#allocation8 + $0x98] sm:$0xff] }
 0x3d0   : > { %5207 = vmatprep.subr.bf16.mxu0 %v5878_v4  ;;  %v3384_v24 = vrot.slane %v3382_v30, 7  ;;  %v3390_v50 = vrot.slane %v3385_v38, 1  ;;  %v5273_v28 = vpack.c.bf16 %v4203_v19, %v4202_v31  ;;  %v4840_v31 = vld [vmem:[%s7341_s17 + $0x1] ss:$2 sm:$0x3] }
 0x3d2   : > { %v3387_v45 = vor.u32 %v3385_v38, %v3384_v24  ;;  %v3391_v62 = vor.u32 %v3390_v50, %v3382_v30  ;;  %v5600_v38 = vld [vmem:[%s7277_s12] ss:$8 sps:$4 sm:$0xff]   ;;  %v5617_v50 = vld [vmem:[%s7277_s12 + $0x54] ss:$8 sps:$4 sm:$0xff]  }
 0x3d3   : > { %5208 = vmatpush3.bf16.msra.mxu0 %v5561_v23  ;;  %v4758_v23 = vld [vmem:[%s7276_s11] ss:$0 sm:$0xff] }
 0x3d4   : > { %5209 = vmatprep.subr.bf16.mxu0 %v5878_v4  ;;  %v3389_v5 = vsel %vm6599_vm10, 0, %v3387_v45  ;;  %v3393_v16 = vsel %vm6667_vm13, %v3391_v62, 0  ;;  %v5620_v62 = vld [vmem:[%s7277_s12 + $0x64] ss:$8 sps:$4 sm:$0xff]  }
 0x3d7   : > { %5210 = vmatpush3.bf16.msra.mxu0 %v5562_v33 }
 0x3d8   : > { %5211 = vmatprep.subr.bf16.mxu0 %v5878_v4 }
 0x3db   : > { %5212 = vmatpush3.bf16.msra.mxu0 %v5563_v61  ;;  %v4759_v61 = vld [vmem:[%s7276_s11 + $0x1] ss:$0 sm:$0xff] }
 0x3dc   : > { %5213 = vmatprep.subr.bf16.mxu0 %v5878_v4 }
 0x3df   : > { %5214 = vmatpush3.bf16.msra.mxu0 %v5564_v47 }
 0x3e0   : > { %5215 = vmatprep.subr.bf16.mxu0 %v5878_v4 }
 0x3e3   : > { %5216 = vmatpush3.bf16.msra.mxu0 %v5565_v44 }
 0x3e4   : > { %5217 = vmatprep.subr.bf16.mxu0 %v5878_v4 }
 0x3e7   : > { %5218 = vmatpush3.bf16.msra.mxu0 %v5566_v59 }
 0x3e8   : > { %5219 = vmatprep.subr.bf16.mxu0 %v5878_v4 }
 0x3eb   : > { %5220 = vmatpush3.bf16.msra.mxu0 %v5567_v55 }
 0x3ec   : > { %5225 = vmatprep.subr.bf16.mxu0 %v5878_v4 }
 0x3ee   : > { %5222 = vmatmul.mubr.bf16.vlgmr.msra.gmra.mrb[20].mxu0 %v3389_v5  ;;  %v5603_v5 = vld [vmem:[%s7277_s12 + $0x10] ss:$8 sps:$4 sm:$0xff]  }
 0x3ef   : > { %5226 = vmatpush3.bf16.msra.mxu0 %v5568_v48  ;;  %5241 = vmatprep.mubr.msk.bf16.mxu0 %vm5879_vm14, %v5878_v4  ;;  %v5605_v48 = vld [vmem:[%s7277_s12 + $0x14] ss:$8 sps:$4 sm:$0xff]  }
 0x3f0   : > { %5227 = vmatprep.subr.bf16.mxu0 %v5878_v4 }
 0x3f3   : > { %5228 = vmatpush3.bf16.msra.mxu0 %v5569_v12  ;;  %v5608_v12 = vld [vmem:[%s7277_s12 + $0x24] ss:$8 sps:$4 sm:$0xff]  }
 0x3f4   : > { %5229 = vmatprep.subr.bf16.mxu0 %v5878_v4 }
 0x3f7   : > { %5230 = vmatpush3.bf16.msra.mxu0 %v5570_v0  ;;  %v5606_v0 = vld [vmem:[%s7277_s12 + $0x20] ss:$8 sps:$4 sm:$0xff]  }
 0x3f8   : > { %5231 = vmatprep.subr.bf16.mxu0 %v5878_v4 }
 0x3fb   : > { %5232 = vmatpush3.bf16.msra.mxu0 %v5571_v8  ;;  %v5611_v8 = vld [vmem:[%s7277_s12 + $0x34] ss:$8 sps:$4 sm:$0xff]  }
 0x3fc   : > { %5233 = vmatprep.subr.bf16.mxu0 %v5878_v4 }
 0x3ff   : > { %5234 = vmatpush3.bf16.msra.mxu0 %v5572_v2  ;;  %v5609_v2 = vld [vmem:[%s7277_s12 + $0x30] ss:$8 sps:$4 sm:$0xff]  }
 0x400   : > { %5235 = vmatprep.subr.bf16.mxu0 %v5878_v4 }
 0x403   : > { %5236 = vmatpush3.bf16.msra.mxu0 %v5573_v43  ;;  %v5614_v43 = vld [vmem:[%s7277_s12 + $0x44] ss:$8 sps:$4 sm:$0xff]  }
 0x404   : > { %5237 = vmatprep.subr.bf16.mxu0 %v5878_v4 }
 0x407   : > { %5238 = vmatpush3.bf16.msra.mxu0 %v5574_v6  ;;  %v5612_v6 = vld [vmem:[%s7277_s12 + $0x40] ss:$8 sps:$4 sm:$0xff]  }
 0x408   : > { %5239 = vmatprep.subr.bf16.mxu0 %v5878_v4  ;;  %v5880_v4 = vmov 0  }
 0x409   : > { %3881 = vmatprep.mubr.bf16.mxu1 %v5880_v4 }
 0x40b   : > { %5240 = vmatpush3.bf16.msra.mxu0 %v5575_v11  ;;  %v5615_v11 = vld [vmem:[%s7277_s12 + $0x50] ss:$8 sps:$4 sm:$0xff]  }
 0x40c   : > { %5245 = vmatprep.subr.bf16.mxu0 %v5881_v35 }
 0x40e   : > { %5242 = vmatmul.mubr.bf16.vlgmr.msra.gmra.mrb[20].mxu0 %v3393_v16 }
 0x40f   : > { %5247 = vmatpush1.bf16.msra.mxu0 %v5246_v22  ;;  %v5629_v22 = vld [vmem:[%s7277_s12 + $0x114] ss:$8 sps:$4 sm:$0xff]  }
 0x410   : > { %5248 = vmatprep.subr.bf16.mxu0 %v5881_v35 }
 0x413   : > { %5250 = vmatpush1.bf16.msra.mxu0 %v5249_v56  ;;  %v5627_v56 = vld [vmem:[%s7277_s12 + $0x110] ss:$8 sps:$4 sm:$0xff]  }
 0x414   : > { %5251 = vmatprep.subr.bf16.mxu0 %v5881_v35 }
 0x417   : > { %5253 = vmatpush1.bf16.msra.mxu0 %v5252_v14  ;;  %v5638_v14 = vld [vmem:[%s7277_s12 + $0x144] ss:$8 sps:$4 sm:$0xff]  }
 0x418   : > { %5254 = vmatprep.subr.bf16.mxu0 %v5881_v35 }
 0x41b   : > { %5256 = vmatpush1.bf16.msra.mxu0 %v5255_v63  ;;  %v5639_v63 = vld [vmem:[%s7277_s12 + $0x150] ss:$8 sps:$4 sm:$0xff]  }
 0x41c   : > { %5257 = vmatprep.subr.bf16.mxu0 %v5881_v35 }
 0x41f   : > { %5259 = vmatpush1.bf16.msra.mxu0 %v5258_v25  ;;  %v5647_v25 = vld [vmem:[%s7277_s12 + $0x174] ss:$8 sps:$4 sm:$0xff]  }
 0x420   : > { %5260 = vmatprep.subr.bf16.mxu0 %v5881_v35 }
 0x423   : > { %5262 = vmatpush1.bf16.msra.mxu0 %v5261_v37 }
 0x424   : > { %5263 = vmatprep.subr.bf16.mxu0 %v5881_v35 }
 0x427   : > { %5265 = vmatpush1.bf16.msra.mxu0 %v5264_v9  ;;  %v4205_v9 = vld [vmem:[#allocation8 + $0xa8] sm:$0xff] }
 0x428   : > { %5266 = vmatprep.subr.bf16.mxu0 %v5881_v35  ;;  %v5276_v21 = vpack.c.bf16 %v4205_v9, %v4204_v17 }
 0x42b   : > { %5268 = vmatpush1.bf16.msra.mxu0 %v5267_v18  ;;  %v4207_v18 = vld [vmem:[#allocation8 + $0xb8] sm:$0xff] }
 0x42c   : > { %5269 = vmatprep.subr.bf16.mxu0 %v5881_v35  ;;  %v5279_v15 = vpack.c.bf16 %v4207_v18, %v4206_v10 }
 0x42f   : > { %5271 = vmatpush1.bf16.msra.mxu0 %v5270_v20  ;;  %v4151_v20 = vld [vmem:[%s7340_s21] ss:$2 sm:$0x3]  ;;  %s5764_s21 = sshll.u32 %s5882_s27, 4  ;;  %s5765_s21 = int_to_ptr.vmem [resolvable:$false] %s5764_s21 }
 0x430   : > { %5272 = vmatprep.subr.bf16.mxu0 %v5881_v35  ;;  %v4156_v19 = vrot.slane %v4151_v20, %v4155_v58  ;;  %s5766_s5 = scalar_lea.vmem %s5765_s21, 512  ;;  %p5767_p6 = scmp.lt.s32.totalorder %s4304_s24, %s5765_s21 }
 0x431   : > { %p5768_p9 = scmp.lt.s32.totalorder %s5766_s5, %s5760_s23 }
 0x433   : > { %5274 = vmatpush1.bf16.msra.mxu0 %v5273_v28  ;;  %v4160_v28 = vrot.slane %v4151_v20, %v4159_v13  ;;  %p5769_p5 = por %p5768_p9, %p5767_p6 }
 0x434   : > { %5275 = vmatprep.subr.bf16.mxu0 %v5881_v35 }
 0x435   : > { %p5770_p10 = pnand %p5769_p5, %p5763_p1 }
 0x437   : > { %5277 = vmatpush1.bf16.msra.mxu0 %v5276_v21 }
 0x438   : > { %5278 = vmatprep.subr.bf16.mxu0 %v5881_v35  ;;  %v4171_v35 = vrot.slane %v4840_v31, %v4155_v58 }
 0x43b   : > { %5280 = vmatpush1.bf16.msra.mxu0 %v5279_v15 }
 0x4e1   : > { %v3702_v33 = vpop.f32.mrb[20].mxu0 }
 0x4e2   : > { %v3714_v47 = vmul.f32 %v4758_v23, %v3702_v33  ;;  %v5243_v44 = vpop.f32.mrb[21].mxu0  ;;  %v4175_v33 = vrot.slane %v4840_v31, %v4159_v13 }
 0x4e3   : > { %v3705_v30 = vpop.f32.mrb[22].mxu0 }
 0x4e4   : > { %v3720_v59 = vadd.f32 %v4759_v61, %v3714_v47  ;;  %v5244_v24 = vpop.f32.mrb[23].mxu0 }
 0x4e6   : > { %v3721_v55 = vmax.f32 %v3720_v59, 0.0 }
 0x4e8   : > { %v7072_v45 = vpack.c.bf16 %v3721_v55, %v3721_v55 }
 0x4ea   : > { %3882 = vmatmul.mubr.bf16.vlgmr.msra.gmra.mrb[12].mxu1 %v7072_v45  ;;  %v3724_v16 = vshrl.u32 %v7072_v45, 16  ;;  %v3727_v29 = vshll.u32 %v7072_v45, 16 }
 0x4eb   : > { %3971 = vmatpush1.bf16.msra.mxu1 %v5600_v38  ;;  %4002 = vmatprep.mubr.bf16.mxu1 %v5880_v4 }
 0x4ec   : > { %3972 = vmatprep.subr.bf16.mxu1 %v5605_v48  ;;  %v3726_v7 = vrot.slane %v3724_v16, 7  ;;  %v3732_v49 = vrot.slane %v3727_v29, 1 }
 0x4ee   : > { %v3729_v41 = vor.u32 %v3727_v29, %v3726_v7  ;;  %v3733_v37 = vor.u32 %v3732_v49, %v3724_v16 }
 0x4ef   : > { %3973 = vmatpush1.bf16.msra.mxu1 %v5603_v5 }
 0x4f0   : > { %3974 = vmatprep.subr.bf16.mxu1 %v5608_v12  ;;  %v3731_v36 = vsel %vm6599_vm10, 0, %v3729_v41  ;;  %v3735_v42 = vsel %vm6667_vm13, %v3733_v37, 0 }
 0x4f3   : > { %3975 = vmatpush1.bf16.msra.mxu1 %v5606_v0 }
 0x4f4   : > { %3976 = vmatprep.subr.bf16.mxu1 %v5611_v8 }
 0x4f7   : > { %3977 = vmatpush1.bf16.msra.mxu1 %v5609_v2 }
 0x4f8   : > { %3978 = vmatprep.subr.bf16.mxu1 %v5614_v43 }
 0x4fb   : > { %3979 = vmatpush1.bf16.msra.mxu1 %v5612_v6 }
 0x4fc   : > { %3980 = vmatprep.subr.bf16.mxu1 %v5617_v50 }
 0x4ff   : > { %3981 = vmatpush1.bf16.msra.mxu1 %v5615_v11 }
 0x500   : > { %3982 = vmatprep.subr.bf16.mxu1 %v5620_v62 }
 0x503   : > { %3983 = vmatpush1.bf16.msra.mxu1 %v5618_v26 }
 0x504   : > { %3984 = vmatprep.subr.bf16.mxu1 %v5623_v52 }
 0x507   : > { %3985 = vmatpush1.bf16.msra.mxu1 %v5621_v1 }
 0x508   : > { %4108 = vmatprep.subr.bf16.mxu1 %v5626_v32 }
 0x50a   : > { %4003 = vmatmul.mubr.bf16.vlgmr.msra.gmra.mrb[12].mxu1 %v3731_v36 }
 0x50b   : > { %4109 = vmatpush1.bf16.msra.mxu1 %v5624_v39  ;;  %4140 = vmatprep.mubr.bf16.mxu1 %v5880_v4  ;;  %v5633_v4 = vld [vmem:[%s7277_s12 + $0x130] ss:$8 sps:$4 sm:$0xff]  }
 0x50c   : > { %4110 = vmatprep.subr.bf16.mxu1 %v5629_v22 }
 0x50f   : > { %4111 = vmatpush1.bf16.msra.mxu1 %v5627_v56 }
 0x510   : > { %4112 = vmatprep.subr.bf16.mxu1 %v5632_v40 }
 0x513   : > { %4113 = vmatpush1.bf16.msra.mxu1 %v5630_v27 }
 0x514   : > { %4114 = vmatprep.subr.bf16.mxu1 %v5635_v53 }
 0x517   : > { %4115 = vmatpush1.bf16.msra.mxu1 %v5633_v4 }
 0x518   : > { %4116 = vmatprep.subr.bf16.mxu1 %v5638_v14 }
 0x51b   : > { %4117 = vmatpush1.bf16.msra.mxu1 %v5636_v60 }
 0x51c   : > { %4118 = vmatprep.subr.bf16.mxu1 %v5641_v34 }
 0x51f   : > { %4119 = vmatpush1.bf16.msra.mxu1 %v5639_v63 }
 0x520   : > { %4120 = vmatprep.subr.bf16.mxu1 %v5644_v54 }
 0x523   : > { %4121 = vmatpush1.bf16.msra.mxu1 %v5642_v51 }
 0x524   : > { %4122 = vmatprep.subr.bf16.mxu1 %v5647_v25 }
 0x527   : > { %4123 = vmatpush1.bf16.msra.mxu1 %v5645_v57 }
 0x52a   : > { %4141 = vmatmul.mubr.bf16.vlgmr.msra.gmra.mrb[12].mxu1 %v3735_v42 }
 0x5fd   : > { %v4142_v23 = vpop.f32.mrb[12].mxu1 }
 0x5fe   : > { %v4163_v61 = vmul.f32 %v4156_v19, %v4142_v23  ;;  %v4144_v47 = vpop.f32.mrb[13].mxu1 }
 0x5ff   : > { %v4164_v44 = vmul.f32 %v4160_v28, %v4144_v47  ;;  %v4146_v30 = vpop.f32.mrb[14].mxu1 }
 0x600   : > { %v4178_v3 = vadd.f32 %v4171_v35, %v4163_v61  ;;  %v4147_v59 = vpop.f32.mrb[15].mxu1 }
 0x601   : > { %v4179_v24 = vadd.f32 %v4175_v33, %v4164_v44 }
 0x602   : > { %4180 = vst [vmem:[%s592_s13] sm:$0xff] %v4178_v3 }
 0x603   : > { %4182 = vst.msk [vmem:[%s592_s13 + $0x8] sm:$0xff] %vm4181_vm15, %v4179_v24  ;;  %4841 = vmatprep.mubr.msk.f32.mxu0 %vm4181_vm15, %v4179_v24 }
 0x604   : > { %4276 = vmatmul.mubr.f32.vlgmr.msra.gmra.mrb[24].mxu0 %v4178_v3 }
 0x605   : > { %5773 = shalt.err (!%p5770_p10)
}
 0x606   : > { %s5774_s16 = scalar_lea.hbm %s7190_s30, 256  ;;  %s5778_s15 = scalar_lea.hbm %s7343_s28, 512 }
 0x607   : > { %p5775_p0 = scmp.ne.s32.totalorder %s7190_s30, %s5774_s16  ;;  %p5779_p4 = scmp.lt.u32.totalorder %s7190_s30, %s7343_s28 }
 0x608   : > { %p5780_p12 = scmp.lt.u32.totalorder %s5778_s15, %s5774_s16  ;;  %p5782_p8 = scmp.lt.u32.totalorder %s5774_s16, %s7190_s30 }
 0x609   : > { %p5776_p2 = pnand %p5775_p0, %p7344_p11 }
 0x60a   : > { %p5781_p7 = por %p5780_p12, %p5779_p4 }
 0x60b   : > { %p5777_p3 = pneg %p5776_p2 }
 0x60c   : > { %p5783_p13 = por %p5782_p8, %p5781_p7 }
 0x60e   : > { %p5784_p1 = pnand %p5783_p13, %p5777_p3 }
 0x610   : > { %5787 = shalt.err (!%p5784_p1)
}
 0x611   : > { %5329 = dma.vmem_to_hbm [thread:$0]  (%p7344_p11), %s4304_s24, 256, %s7190_s30, %s4284_s20  }
 0x612   : > { %s7345_s21 = sld [smem:[#allocation26_spill]]  ;;  %s4473_s16 = sshll.u32 %s7180_s29, 3 }
 0x613   : > { %s4846_s15 = sshll.u32 %s5990_s25, 7  ;;  %s599_s0 = scalar_lea.vmem [#allocation11], %s4473_s16 }
 0x614   : > { %s4316_s19 = sshll.u32 %s599_s0, 4  ;;  %s7347_s20 = sld [smem:[#allocation29_spill]]  ;;  %s7224_s19 = int_to_ptr.vmem [resolvable:$true] %s4316_s19 }
 0x615   : > { %s4289_s27 = scalar_lea.sflag [#allocation12], %s7180_s29  ;;  %s5883_s25 = smov [#allocation11]  }
 0x616   : > { %s5792_s18 = sshll.u32 %s5883_s25, 4  ;;  %s5793_s18 = int_to_ptr.vmem [resolvable:$false] %s5792_s18 }
 0x617   : > { %s5794_s13 = scalar_lea.vmem %s5793_s18, 256  ;;  %p5795_p10 = scmp.lt.s32.totalorder %s7224_s19, %s5793_s18 }
 0x618   : > { %s7346_s5 = smov %s7345_s21  ;;  %v4656_v55 = vld [vmem:[%s7345_s21] ss:$0 sm:$0xff]  ;;  %s5788_s21 = scalar_lea.vmem %s7224_s19, 128 }
 0x619   : > { %v2182_v38 = vmul.f32 %v4656_v55, %v6969_v46  ;;  %v4657_v45 = vld [vmem:[%s7346_s5 + $0x1] ss:$0 sm:$0xff]  ;;  %p5789_p6 = scmp.ne.s32.totalorder %s7224_s19, %s5788_s21  ;;  %p5796_p0 = scmp.lt.s32.totalorder %s5794_s13, %s5788_s21 }
 0x61a   : > { %s7222_s23 = scalar_lea.hbm %s7347_s20, %s4846_s15 }
 0x61b   : > { %v2188_v48 = vadd.f32 %v4657_v45, %v2182_v38  ;;  %p5790_p9 = pnand %p5789_p6, %p7344_p11  ;;  %p5797_p2 = por %p5796_p0, %p5795_p10 }
 0x61d   : > { %v2189_v5 = vmax.f32 %v2188_v48, 0.0  ;;  %p5791_p5 = pneg %p5790_p9 }
 0x61f   : > { %p5798_p3 = pnand %p5797_p2, %p5791_p5 }
 0x6d7   : > { %v4277_v12 = vpop.f32.mrb[24].mxu0 }
 0x6d8   : > { %v4281_v0 = vadd.f32 %v4277_v12, %v2189_v5  ;;  %v4279_v8 = vpop.f32.mrb[25].mxu0 }
 0x6da   : > { %4282 = vst [vmem:[%s599_s0] sm:$0xff] %v4281_v0 }
 0x6db   : > { %5801 = shalt.err (!%p5798_p3)
}
 0x6dc   : > { %s5802_s29 = scalar_lea.hbm %s7222_s23, 128  ;;  %s5806_s0 = scalar_lea.hbm %s7347_s20, 256 }
 0x6dd   : > { %p5803_p4 = scmp.ne.s32.totalorder %s7222_s23, %s5802_s29  ;;  %p5807_p8 = scmp.lt.u32.totalorder %s7222_s23, %s7347_s20 }
 0x6de   : > { %p5808_p13 = scmp.lt.u32.totalorder %s5806_s0, %s5802_s29  ;;  %p5810_p6 = scmp.lt.u32.totalorder %s5802_s29, %s7222_s23 }
 0x6df   : > { %p5804_p12 = pnand %p5803_p4, %p7344_p11 }
 0x6e0   : > { %p5809_p1 = por %p5808_p13, %p5807_p8 }
 0x6e1   : > { %p5805_p7 = pneg %p5804_p12 }
 0x6e2   : > { %p5811_p9 = por %p5810_p6, %p5809_p1 }
 0x6e4   : > { %p5812_p5 = pnand %p5811_p9, %p5805_p7 }
 0x6e6   : > { %5815 = shalt.err (!%p5812_p5)
}
 0x6e7   : > { %5330 = dma.vmem_to_hbm [thread:$0]  (%p7344_p11), %s7224_s19, 128, %s7222_s23, %s4289_s27  }
 0x6e8 PF: > { %s7348_s21 = sld [smem:[#allocation20_spill]]  ;;  %s7349_s25 = sld [smem:[#allocation18_spill]] }
 0x6e9   : > { %s7350_s18 = sld [smem:[#allocation24_spill]] }
 0x6ee   : > { %p5361_p10 = scmp.ge.s32.totalorder %s7348_s21, 2  ;;  %s4328_s13 = sand.u32 1, %s7349_s25  }
 0x6ef   : > { %p7351_p0 = scmp.ne.s32.totalorder %s7350_s18, 0  ;;  %s4329_s16 = scalar_lea.sflag [#allocation4], %s4328_s13 }
 0x6f1   : > { %p5347_p2 = pnand %p5361_p10, %p7351_p0 }
 0x6f3   : > { %5845 = dma.done.wait (!%p5347_p2), %s4329_s16, 256  }
 0x6f4   : > { %5847 = vsyncadd (!%p5347_p2), %s4329_s16, 4294967040  ;;  %s4338_s29 = scalar_lea.sflag [#allocation12], %s4328_s13 }
 0x6f5   : > { %5849 = dma.done.wait (!%p5347_p2), %s4338_s29, 128  }
 0x6f6   : > { %5851 = vsyncadd (!%p5347_p2), %s4338_s29, 4294967168  ;;  %s7352_s24 = sld [smem:[#allocation21_spill]]  ;;  %s7353_s26 = sld [smem:[#allocation19_spill]] }
 0x6f7   : > { %s7354_s23 = sld [smem:[#allocation22_spill]]  ;;  %s7355_s21 = smov %s5858_s22 }
 0x6fc   : > { %p33_p11 = scmp.ge.s32.totalorder %s7352_s24, 4   ;;  %s7356_s22 = smov %s7353_s26 }
 0x6fe   :  { %35 = sbr.rel (!%p33_p11) target bundleno = 14 (0xe), region = 165 }
 0x705   :  { %4343 = vsyncpa [#allocation3], 1 }
 0x706   :  { %4345 = vsyncpa [#allocation3 + $0x1], 1 }
 0x707   :  { %4346 = vsyncpa [#allocation6], 1 }
 0x708   :  { %4347 = vsyncpa [#allocation9], 1 }
 0x709   :  { %4348 = vsyncpa [#allocation4], 1 }
 0x70a   :  { %4350 = vsyncpa [#allocation4 + $0x1], 1 }
 0x70b   :  { %4351 = vsyncpa [#allocation12], 1 }
 0x70c   :  { %4353 = vsyncpa [#allocation12 + $0x1], 1 }

</bundles_post_ra>
